<compile_context>
chip_gen: v5e
topology: v5e:2x2
jax: 0.10.0
libtpu: 0.0.40
codegen_flags: <defaults>
</compile_context>

<pallas_src>
import jax
import jax.numpy as jnp
import numpy as np
from jax.experimental import pallas as pl
from jax.experimental.pallas import tpu as pltpu

# ---- model hyper-parameters (small, consistent with the module __init__) ----
H = 32     # hidden_units
L = 2      # layers_num
FC = 64    # fc_dim
DV = 64    # video_embedding_dim
DA = 32    # audio_embedding_dim
B = 2      # batch per branch
T = 8      # sequence length

# ---- padded / fused kernel dimensions ----
NB = 2 * B          # fused batch: rows [0,B) = branch 0, [B,2B) = branch 1
NBP = 8             # fused batch padded to the 8-sublane granule (rows 4:8 zero)
DP = 128            # padded feature width (video / hidden inputs)
GP = 4 * H          # packed gate width = 128 (i,f,g,o in 32-lane blocks)
FCP = 128           # padded tail width (fc / cb / out outputs)


def make_kernel(num_layers, seq_len, nbp, b, hh):
    def sigmoid(x):
        # exact sigmoid via tanh (robust Mosaic lowering, 1 EUP push)
        return 0.5 * jnp.tanh(0.5 * x) + 0.5

    def kernel(v_ref, a_ref, lstm_w_ref, lstm_b_ref, tail_w_ref, tail_b_ref,
               o_ref, gin_ref, hseq_ref):
        # v_ref:      (T*NBP, DP)   bf16, time-major (row = t*NBP + n)
        # a_ref:      (NBP, DP)     bf16, audio padded to 128 lanes
        # lstm_w_ref: (2L, DP, GP)  bf16, [2l] = W_ih^T, [2l+1] = W_hh^T (rows 0:H)
        # lstm_b_ref: (L, 1, GP)    f32,  b_ih + b_hh
        # tail_w_ref: (5, DP, FCP)  bf16, [fc_h, fc_a, cb_0, cb_1, out]
        # tail_b_ref: (3, 1, FCP)   f32,  [fc_b, cb_b, out_b]
        # o_ref:      (B, FCP)      f32,  logits live in lanes 0:2
        # gin_ref:    (T*NBP, GP)   f32 scratch, hoisted input projection + bias
        # hseq_ref:   (T*NBP, H)    f32 scratch, hidden sequence handoff

        h_last = None
        for l in range(num_layers):
            w_ih = lstm_w_ref[2 * l]                      # (DP, GP) bf16
            # only H rows of W_hh are meaningful: stream 32 rows per step,
            # held in vregs across the whole time loop.
            w_hh = lstm_w_ref[2 * l + 1][:hh, :]          # (H, GP)  bf16
            bias = lstm_b_ref[l]                          # (1, GP)  f32

            # Hoisted input projection (bias folded in) -> VMEM scratch.
            if l == 0:
                gin_ref[...] = jnp.dot(
                    v_ref[...], w_ih,
                    preferred_element_type=jnp.float32) + bias
            else:
                gin_ref[...] = jnp.dot(
                    hseq_ref[...].astype(jnp.bfloat16), w_ih[:hh, :],
                    preferred_element_type=jnp.float32) + bias

            h = jnp.zeros((nbp, hh), jnp.float32)
            c = jnp.zeros((nbp, hh), jnp.float32)
            for t in range(seq_len):
                r = t * nbp                               # 8-row aligned
                g = gin_ref[r:r + nbp, :] + jnp.dot(
                    h.astype(jnp.bfloat16), w_hh,
                    preferred_element_type=jnp.float32)   # (NBP, GP) f32
                # PyTorch gate order (i, f, g, o), 32 lanes each.
                i = sigmoid(g[:, 0 * hh:1 * hh])
                f = sigmoid(g[:, 1 * hh:2 * hh])
                gg = jnp.tanh(g[:, 2 * hh:3 * hh])
                o = sigmoid(g[:, 3 * hh:4 * hh])
                c = f * c + i * gg
                h = o * jnp.tanh(c)
                if l + 1 < num_layers:
                    hseq_ref[r:r + nbp, :] = h            # aligned store
            h_last = h                                    # (NBP, H) f32

        # ------------------------------ tail ---------------------------------
        fc_wh = tail_w_ref[0][:hh, :]                     # (H, FCP) bf16
        fc_wa = tail_w_ref[1]                             # (DP, FCP)
        cb_w0, cb_w1, out_w = tail_w_ref[2], tail_w_ref[3], tail_w_ref[4]
        fc_b, cb_b, out_b = tail_b_ref[0], tail_b_ref[1], tail_b_ref[2]

        # fc(cat([x[:, -1, :], audio])) for both branches at once.
        x = (jnp.dot(h_last.astype(jnp.bfloat16), fc_wh,
                     preferred_element_type=jnp.float32)
             + jnp.dot(a_ref[...], fc_wa, preferred_element_type=jnp.float32)
             + fc_b)
        # branch dropout (p=0.0) -> identity; then ReLU
        x = jnp.maximum(x, 0.0)                           # (NBP, FCP)

        # concat_branches(cat([x0, x1])) == x0 @ W[:, :FC]^T + x1 @ W[:, FC:]^T
        x0 = x[0:b, :].astype(jnp.bfloat16)
        x1 = x[b:2 * b, :].astype(jnp.bfloat16)
        y = (jnp.dot(x0, cb_w0, preferred_element_type=jnp.float32)
             + jnp.dot(x1, cb_w1, preferred_element_type=jnp.float32)
             + cb_b)
        # dropout_last (eval) -> identity; F.relu; then out linear
        y = jnp.maximum(y, 0.0)
        o_ref[...] = (jnp.dot(y.astype(jnp.bfloat16), out_w,
                              preferred_element_type=jnp.float32) + out_b)

    return kernel


# ------------------------------- wrapper --------------------------------------
def pack_inputs(inputs):
    """Fuse both branches, go time-major, pad rows to 8 and lanes to 128."""
    v0, a0, v1, a1 = inputs
    v = jnp.concatenate([v0, v1], axis=0)                      # (NB, T, DV)
    v = jnp.transpose(v, (1, 0, 2))                            # (T, NB, DV)
    v = jnp.pad(v, ((0, 0), (0, NBP - NB), (0, DP - DV)))      # (T, NBP, DP)
    v = v.reshape(T * NBP, DP).astype(jnp.bfloat16)            # row = t*NBP + n
    a = jnp.concatenate([a0, a1], axis=0)                      # (NB, DA)
    a = jnp.pad(a, ((0, NBP - NB), (0, DP - DA))).astype(jnp.bfloat16)
    return v, a


def lstm_siamese_forward(inputs, packed_params):
    v, a = pack_inputs(inputs)
    lstm_w, lstm_b, tail_w, tail_b = packed_params
    out = pl.pallas_call(
        make_kernel(L, T, NBP, B, H),
        out_shape=jax.ShapeDtypeStruct((B, FCP), jnp.float32),
        in_specs=[pl.BlockSpec(memory_space=pltpu.MemorySpace.VMEM)] * 6,
        out_specs=pl.BlockSpec(memory_space=pltpu.MemorySpace.VMEM),
        scratch_shapes=[
            pltpu.VMEM((T * NBP, GP), jnp.float32),   # hoisted input projection
            pltpu.VMEM((T * NBP, H), jnp.float32),    # hidden-sequence handoff
        ],
    )(v, a, lstm_w, lstm_b, tail_w, tail_b)
    return out[:, :2]                                          # (B, 2) logits


# ---------------------------- parameter setup ---------------------------------
def init_params(key):
    """Deterministic synthetic init following the PyTorch shapes."""
    ks = jax.random.split(key, 4 * L + 6)
    it = iter(ks)
    raw = {}

    in_dim = DV
    raw["lstm"] = []
    for _ in range(L):
        bound = 1.0 / np.sqrt(H)
        wih = jax.random.uniform(next(it), (4 * H, in_dim), jnp.float32, -bound, bound)
        whh = jax.random.uniform(next(it), (4 * H, H), jnp.float32, -bound, bound)
        bih = jax.random.uniform(next(it), (4 * H,), jnp.float32, -bound, bound)
        bhh = jax.random.uniform(next(it), (4 * H,), jnp.float32, -bound, bound)
        raw["lstm"].append((wih, whh, bih, bhh))
        in_dim = H

    bound = 1.0 / np.sqrt(H + DA)
    fc_w = jax.random.uniform(next(it), (FC, H + DA), jnp.float32, -bound, bound)
    fc_b = jax.random.uniform(next(it), (FC,), jnp.float32, -bound, bound)
    raw["fc"] = (fc_w, fc_b)

    bound = 1.0 / np.sqrt(2 * FC)
    cb_w = jax.random.uniform(next(it), (64, 2 * FC), jnp.float32, -bound, bound)
    cb_b = jax.random.uniform(next(it), (64,), jnp.float32, -bound, bound)
    raw["cb"] = (cb_w, cb_b)

    bound = 1.0 / np.sqrt(64)
    out_w = jax.random.uniform(next(it), (2, 64), jnp.float32, -bound, bound)
    out_b = jax.random.uniform(next(it), (2,), jnp.float32, -bound, bound)
    raw["out"] = (out_w, out_b)
    return raw


def pack_params(raw):
    """Pack all weights into 4 slabs (bf16 weights, f32 biases), GP = 4*H."""
    lstm_w = np.zeros((2 * L, DP, GP), np.float32)
    lstm_b = np.zeros((L, 1, GP), np.float32)
    for l, (wih, whh, bih, bhh) in enumerate(raw["lstm"]):
        wihT = np.asarray(wih).T                  # (Din, 4H) — natural gate order
        whhT = np.asarray(whh).T                  # (H,   4H)
        lstm_w[2 * l, :wihT.shape[0], :] = wihT
        lstm_w[2 * l + 1, :H, :] = whhT
        lstm_b[l, 0, :] = np.asarray(bih) + np.asarray(bhh)

    tail_w = np.zeros((5, DP, FCP), np.float32)
    tail_b = np.zeros((3, 1, FCP), np.float32)
    fc_w, fc_b = np.asarray(raw["fc"][0]), np.asarray(raw["fc"][1])
    tail_w[0, :H, :FC] = fc_w[:, :H].T            # h_last part of fc
    tail_w[1, :DA, :FC] = fc_w[:, H:].T           # audio part of fc
    tail_b[0, 0, :FC] = fc_b
    cb_w, cb_b = np.asarray(raw["cb"][0]), np.asarray(raw["cb"][1])
    tail_w[2, :FC, :64] = cb_w[:, :FC].T          # branch-0 half of concat_branches
    tail_w[3, :FC, :64] = cb_w[:, FC:].T          # branch-1 half
    tail_b[1, 0, :64] = cb_b
    out_w, out_b = np.asarray(raw["out"][0]), np.asarray(raw["out"][1])
    tail_w[4, :64, :2] = out_w.T
    tail_b[2, 0, :2] = out_b

    return (jnp.asarray(lstm_w, jnp.bfloat16),
            jnp.asarray(lstm_b, jnp.float32),
            jnp.asarray(tail_w, jnp.bfloat16),
            jnp.asarray(tail_b, jnp.float32))


# -------------------------- pure-JAX reference --------------------------------
def reference_forward(inputs, raw):
    v0, a0, v1, a1 = inputs

    def lstm(x):
        for (wih, whh, bih, bhh) in raw["lstm"]:
            h = jnp.zeros((x.shape[0], H), jnp.float32)
            c = jnp.zeros((x.shape[0], H), jnp.float32)
            outs = []
            for t in range(x.shape[1]):
                g = x[:, t, :] @ wih.T + bih + h @ whh.T + bhh
                i = jax.nn.sigmoid(g[:, 0 * H:1 * H])
                f = jax.nn.sigmoid(g[:, 1 * H:2 * H])
                gg = jnp.tanh(g[:, 2 * H:3 * H])
                o = jax.nn.sigmoid(g[:, 3 * H:4 * H])
                c = f * c + i * gg
                h = o * jnp.tanh(c)
                outs.append(h)
            x = jnp.stack(outs, axis=1)
        return x

    def branch(v, a):
        x = lstm(v)
        fc_w, fc_b = raw["fc"]
        x = jnp.concatenate([x[:, -1, :], a], axis=1) @ fc_w.T + fc_b
        return jax.nn.relu(x)

    x0 = branch(v0, a0)
    x1 = branch(v1, a1)
    cb_w, cb_b = raw["cb"]
    x = jnp.concatenate([x0, x1], axis=1) @ cb_w.T + cb_b
    out_w, out_b = raw["out"]
    return jax.nn.relu(x) @ out_w.T + out_b


# --------------------------------- main ----------------------------------------
if __name__ == "__main__":
    key = jax.random.PRNGKey(0)
    k_v0, k_a0, k_v1, k_a1, k_params = jax.random.split(key, 5)

    v0 = jax.random.normal(k_v0, (B, T, DV), jnp.float32)
    a0 = jax.random.normal(k_a0, (B, DA), jnp.float32)
    v1 = jax.random.normal(k_v1, (B, T, DV), jnp.float32)
    a1 = jax.random.normal(k_a1, (B, DA), jnp.float32)
    inputs = (v0, a0, v1, a1)

    raw_params = init_params(k_params)
    packed_params = pack_params(raw_params)

    out = jax.block_until_ready(lstm_siamese_forward(inputs, packed_params))
    ref = jax.block_until_ready(reference_forward(inputs, raw_params))
    np.testing.assert_allclose(np.asarray(out), np.asarray(ref),
                               rtol=5e-2, atol=5e-2)

    print("KERNEL_OK")
</pallas_src>

<mosaic_0001>
module attributes {stable_mosaic.version = 11 : i64} {
  func.func @kernel(%arg0: memref<64x128xbf16, #tpu.memory_space<vmem>>, %arg1: memref<8x128xbf16, #tpu.memory_space<vmem>>, %arg2: memref<4x128x128xbf16, #tpu.memory_space<vmem>>, %arg3: memref<2x1x128xf32, #tpu.memory_space<vmem>>, %arg4: memref<5x128x128xbf16, #tpu.memory_space<vmem>>, %arg5: memref<3x1x128xf32, #tpu.memory_space<vmem>>, %arg6: memref<2x128xf32, #tpu.memory_space<vmem>>, %arg7: memref<64x128xf32, #tpu.memory_space<vmem>>, %arg8: memref<64x32xf32, #tpu.memory_space<vmem>>) attributes {dimension_semantics = [], scalar_prefetch = 0 : i64, scratch_operands = 2 : i64, tpu.core_type = #tpu.core_type<tc>} {
    %c0 = arith.constant 0 : index
    %c0_0 = arith.constant 0 : index
    %c0_1 = arith.constant 0 : index
    %0 = vector.load %arg2[%c0, %c0_0, %c0_1] : memref<4x128x128xbf16, #tpu.memory_space<vmem>>, vector<1x128x128xbf16>
    %1 = vector.shape_cast %0 : vector<1x128x128xbf16> to vector<128x128xbf16>
    %c1 = arith.constant 1 : index
    %c0_2 = arith.constant 0 : index
    %c0_3 = arith.constant 0 : index
    %2 = vector.load %arg2[%c1, %c0_2, %c0_3] : memref<4x128x128xbf16, #tpu.memory_space<vmem>>, vector<1x128x128xbf16>
    %3 = vector.shape_cast %2 : vector<1x128x128xbf16> to vector<128x128xbf16>
    %4 = vector.extract_strided_slice %3 {offsets = [0, 0], sizes = [32, 128], strides = [1, 1]} : vector<128x128xbf16> to vector<32x128xbf16>
    %c0_4 = arith.constant 0 : index
    %c0_5 = arith.constant 0 : index
    %c0_6 = arith.constant 0 : index
    %5 = vector.load %arg3[%c0_4, %c0_5, %c0_6] : memref<2x1x128xf32, #tpu.memory_space<vmem>>, vector<1x1x128xf32>
    %6 = vector.shape_cast %5 : vector<1x1x128xf32> to vector<1x128xf32>
    %c0_7 = arith.constant 0 : index
    %c0_8 = arith.constant 0 : index
    %7 = vector.load %arg0[%c0_7, %c0_8] : memref<64x128xbf16, #tpu.memory_space<vmem>>, vector<64x128xbf16>
    %cst = arith.constant dense<0.000000e+00> : vector<64x128xf32>
    %8 = tpu.matmul %7, %1, %cst {dimension_numbers = #tpu.dot_dimension_numbers<[1], [0], [0], [1], [0, 0, 1, 1], [], []>} : vector<64x128xbf16>, vector<128x128xbf16>, vector<64x128xf32> -> vector<64x128xf32>
    %9 = vector.broadcast %6 : vector<1x128xf32> to vector<64x128xf32>
    %10 = arith.addf %8, %9 : vector<64x128xf32>
    %c0_9 = arith.constant 0 : index
    %c0_10 = arith.constant 0 : index
    %11 = vector.load %arg7[%c0_9, %c0_10] : memref<64x128xf32, #tpu.memory_space<vmem>>, vector<64x128xf32>
    tpu.vector_store %arg7[%c0_9, %c0_10], %10 {strides = array<i32>} : memref<64x128xf32, #tpu.memory_space<vmem>>, vector<64x128xf32>,
    %cst_11 = arith.constant 0.000000e+00 : f32
    %12 = vector.broadcast %cst_11 : f32 to vector<8x32xf32>
    %cst_12 = arith.constant 0.000000e+00 : f32
    %13 = vector.broadcast %cst_12 : f32 to vector<8x32xf32>
    %c0_13 = arith.constant 0 : index
    %c0_14 = arith.constant 0 : index
    %14 = vector.load %arg7[%c0_13, %c0_14] : memref<64x128xf32, #tpu.memory_space<vmem>>, vector<8x128xf32>
    %15 = arith.truncf %12 : vector<8x32xf32> to vector<8x32xbf16>
    %cst_15 = arith.constant dense<0.000000e+00> : vector<8x128xf32>
    %16 = tpu.matmul %15, %4, %cst_15 {dimension_numbers = #tpu.dot_dimension_numbers<[1], [0], [0], [1], [0, 0, 1, 1], [], []>} : vector<8x32xbf16>, vector<32x128xbf16>, vector<8x128xf32> -> vector<8x128xf32>
    %17 = arith.addf %14, %16 : vector<8x128xf32>
    %18 = vector.extract_strided_slice %17 {offsets = [0, 0], sizes = [8, 32], strides = [1, 1]} : vector<8x128xf32> to vector<8x32xf32>
    %cst_16 = arith.constant 5.000000e-01 : f32
    %19 = vector.broadcast %cst_16 : f32 to vector<8x32xf32>
    %20 = arith.mulf %19, %18 : vector<8x32xf32>
    %21 = math.tanh %20 : vector<8x32xf32>
    %cst_17 = arith.constant 5.000000e-01 : f32
    %22 = vector.broadcast %cst_17 : f32 to vector<8x32xf32>
    %23 = arith.mulf %22, %21 : vector<8x32xf32>
    %cst_18 = arith.constant 5.000000e-01 : f32
    %24 = vector.broadcast %cst_18 : f32 to vector<8x32xf32>
    %25 = arith.addf %23, %24 : vector<8x32xf32>
    %26 = vector.extract_strided_slice %17 {offsets = [0, 32], sizes = [8, 32], strides = [1, 1]} : vector<8x128xf32> to vector<8x32xf32>
    %cst_19 = arith.constant 5.000000e-01 : f32
    %27 = vector.broadcast %cst_19 : f32 to vector<8x32xf32>
    %28 = arith.mulf %27, %26 : vector<8x32xf32>
    %29 = math.tanh %28 : vector<8x32xf32>
    %cst_20 = arith.constant 5.000000e-01 : f32
    %30 = vector.broadcast %cst_20 : f32 to vector<8x32xf32>
    %31 = arith.mulf %30, %29 : vector<8x32xf32>
    %cst_21 = arith.constant 5.000000e-01 : f32
    %32 = vector.broadcast %cst_21 : f32 to vector<8x32xf32>
    %33 = arith.addf %31, %32 : vector<8x32xf32>
    %34 = vector.extract_strided_slice %17 {offsets = [0, 64], sizes = [8, 32], strides = [1, 1]} : vector<8x128xf32> to vector<8x32xf32>
    %35 = math.tanh %34 : vector<8x32xf32>
    %36 = vector.extract_strided_slice %17 {offsets = [0, 96], sizes = [8, 32], strides = [1, 1]} : vector<8x128xf32> to vector<8x32xf32>
    %cst_22 = arith.constant 5.000000e-01 : f32
    %37 = vector.broadcast %cst_22 : f32 to vector<8x32xf32>
    %38 = arith.mulf %37, %36 : vector<8x32xf32>
    %39 = math.tanh %38 : vector<8x32xf32>
    %cst_23 = arith.constant 5.000000e-01 : f32
    %40 = vector.broadcast %cst_23 : f32 to vector<8x32xf32>
    %41 = arith.mulf %40, %39 : vector<8x32xf32>
    %cst_24 = arith.constant 5.000000e-01 : f32
    %42 = vector.broadcast %cst_24 : f32 to vector<8x32xf32>
    %43 = arith.addf %41, %42 : vector<8x32xf32>
    %44 = arith.mulf %33, %13 : vector<8x32xf32>
    %45 = arith.mulf %25, %35 : vector<8x32xf32>
    %46 = arith.addf %44, %45 : vector<8x32xf32>
    %47 = math.tanh %46 : vector<8x32xf32>
    %48 = arith.mulf %43, %47 : vector<8x32xf32>
    %c0_25 = arith.constant 0 : index
    %c0_26 = arith.constant 0 : index
    %49 = vector.load %arg8[%c0_25, %c0_26] : memref<64x32xf32, #tpu.memory_space<vmem>>, vector<8x32xf32>
    tpu.vector_store %arg8[%c0_25, %c0_26], %48 {strides = array<i32>} : memref<64x32xf32, #tpu.memory_space<vmem>>, vector<8x32xf32>,
    %c8 = arith.constant 8 : index
    %c0_27 = arith.constant 0 : index
    %50 = vector.load %arg7[%c8, %c0_27] : memref<64x128xf32, #tpu.memory_space<vmem>>, vector<8x128xf32>
    %51 = arith.truncf %48 : vector<8x32xf32> to vector<8x32xbf16>
    %cst_28 = arith.constant dense<0.000000e+00> : vector<8x128xf32>
    %52 = tpu.matmul %51, %4, %cst_28 {dimension_numbers = #tpu.dot_dimension_numbers<[1], [0], [0], [1], [0, 0, 1, 1], [], []>} : vector<8x32xbf16>, vector<32x128xbf16>, vector<8x128xf32> -> vector<8x128xf32>
    %53 = arith.addf %50, %52 : vector<8x128xf32>
    %54 = vector.extract_strided_slice %53 {offsets = [0, 0], sizes = [8, 32], strides = [1, 1]} : vector<8x128xf32> to vector<8x32xf32>
    %cst_29 = arith.constant 5.000000e-01 : f32
    %55 = vector.broadcast %cst_29 : f32 to vector<8x32xf32>
    %56 = arith.mulf %55, %54 : vector<8x32xf32>
    %57 = math.tanh %56 : vector<8x32xf32>
    %cst_30 = arith.constant 5.000000e-01 : f32
    %58 = vector.broadcast %cst_30 : f32 to vector<8x32xf32>
    %59 = arith.mulf %58, %57 : vector<8x32xf32>
    %cst_31 = arith.constant 5.000000e-01 : f32
    %60 = vector.broadcast %cst_31 : f32 to vector<8x32xf32>
    %61 = arith.addf %59, %60 : vector<8x32xf32>
    %62 = vector.extract_strided_slice %53 {offsets = [0, 32], sizes = [8, 32], strides = [1, 1]} : vector<8x128xf32> to vector<8x32xf32>
    %cst_32 = arith.constant 5.000000e-01 : f32
    %63 = vector.broadcast %cst_32 : f32 to vector<8x32xf32>
    %64 = arith.mulf %63, %62 : vector<8x32xf32>
    %65 = math.tanh %64 : vector<8x32xf32>
    %cst_33 = arith.constant 5.000000e-01 : f32
    %66 = vector.broadcast %cst_33 : f32 to vector<8x32xf32>
    %67 = arith.mulf %66, %65 : vector<8x32xf32>
    %cst_34 = arith.constant 5.000000e-01 : f32
    %68 = vector.broadcast %cst_34 : f32 to vector<8x32xf32>
    %69 = arith.addf %67, %68 : vector<8x32xf32>
    %70 = vector.extract_strided_slice %53 {offsets = [0, 64], sizes = [8, 32], strides = [1, 1]} : vector<8x128xf32> to vector<8x32xf32>
    %71 = math.tanh %70 : vector<8x32xf32>
    %72 = vector.extract_strided_slice %53 {offsets = [0, 96], sizes = [8, 32], strides = [1, 1]} : vector<8x128xf32> to vector<8x32xf32>
    %cst_35 = arith.constant 5.000000e-01 : f32
    %73 = vector.broadcast %cst_35 : f32 to vector<8x32xf32>
    %74 = arith.mulf %73, %72 : vector<8x32xf32>
    %75 = math.tanh %74 : vector<8x32xf32>
    %cst_36 = arith.constant 5.000000e-01 : f32
    %76 = vector.broadcast %cst_36 : f32 to vector<8x32xf32>
    %77 = arith.mulf %76, %75 : vector<8x32xf32>
    %cst_37 = arith.constant 5.000000e-01 : f32
    %78 = vector.broadcast %cst_37 : f32 to vector<8x32xf32>
    %79 = arith.addf %77, %78 : vector<8x32xf32>
    %80 = arith.mulf %69, %46 : vector<8x32xf32>
    %81 = arith.mulf %61, %71 : vector<8x32xf32>
    %82 = arith.addf %80, %81 : vector<8x32xf32>
    %83 = math.tanh %82 : vector<8x32xf32>
    %84 = arith.mulf %79, %83 : vector<8x32xf32>
    %c8_38 = arith.constant 8 : index
    %c0_39 = arith.constant 0 : index
    %85 = vector.load %arg8[%c8_38, %c0_39] : memref<64x32xf32, #tpu.memory_space<vmem>>, vector<8x32xf32>
    tpu.vector_store %arg8[%c8_38, %c0_39], %84 {strides = array<i32>} : memref<64x32xf32, #tpu.memory_space<vmem>>, vector<8x32xf32>,
    %c16 = arith.constant 16 : index
    %c0_40 = arith.constant 0 : index
    %86 = vector.load %arg7[%c16, %c0_40] : memref<64x128xf32, #tpu.memory_space<vmem>>, vector<8x128xf32>
    %87 = arith.truncf %84 : vector<8x32xf32> to vector<8x32xbf16>
    %cst_41 = arith.constant dense<0.000000e+00> : vector<8x128xf32>
    %88 = tpu.matmul %87, %4, %cst_41 {dimension_numbers = #tpu.dot_dimension_numbers<[1], [0], [0], [1], [0, 0, 1, 1], [], []>} : vector<8x32xbf16>, vector<32x128xbf16>, vector<8x128xf32> -> vector<8x128xf32>
    %89 = arith.addf %86, %88 : vector<8x128xf32>
    %90 = vector.extract_strided_slice %89 {offsets = [0, 0], sizes = [8, 32], strides = [1, 1]} : vector<8x128xf32> to vector<8x32xf32>
    %cst_42 = arith.constant 5.000000e-01 : f32
    %91 = vector.broadcast %cst_42 : f32 to vector<8x32xf32>
    %92 = arith.mulf %91, %90 : vector<8x32xf32>
    %93 = math.tanh %92 : vector<8x32xf32>
    %cst_43 = arith.constant 5.000000e-01 : f32
    %94 = vector.broadcast %cst_43 : f32 to vector<8x32xf32>
    %95 = arith.mulf %94, %93 : vector<8x32xf32>
    %cst_44 = arith.constant 5.000000e-01 : f32
    %96 = vector.broadcast %cst_44 : f32 to vector<8x32xf32>
    %97 = arith.addf %95, %96 : vector<8x32xf32>
    %98 = vector.extract_strided_slice %89 {offsets = [0, 32], sizes = [8, 32], strides = [1, 1]} : vector<8x128xf32> to vector<8x32xf32>
    %cst_45 = arith.constant 5.000000e-01 : f32
    %99 = vector.broadcast %cst_45 : f32 to vector<8x32xf32>
    %100 = arith.mulf %99, %98 : vector<8x32xf32>
    %101 = math.tanh %100 : vector<8x32xf32>
    %cst_46 = arith.constant 5.000000e-01 : f32
    %102 = vector.broadcast %cst_46 : f32 to vector<8x32xf32>
    %103 = arith.mulf %102, %101 : vector<8x32xf32>
    %cst_47 = arith.constant 5.000000e-01 : f32
    %104 = vector.broadcast %cst_47 : f32 to vector<8x32xf32>
    %105 = arith.addf %103, %104 : vector<8x32xf32>
    %106 = vector.extract_strided_slice %89 {offsets = [0, 64], sizes = [8, 32], strides = [1, 1]} : vector<8x128xf32> to vector<8x32xf32>
    %107 = math.tanh %106 : vector<8x32xf32>
    %108 = vector.extract_strided_slice %89 {offsets = [0, 96], sizes = [8, 32], strides = [1, 1]} : vector<8x128xf32> to vector<8x32xf32>
    %cst_48 = arith.constant 5.000000e-01 : f32
    %109 = vector.broadcast %cst_48 : f32 to vector<8x32xf32>
    %110 = arith.mulf %109, %108 : vector<8x32xf32>
    %111 = math.tanh %110 : vector<8x32xf32>
    %cst_49 = arith.constant 5.000000e-01 : f32
    %112 = vector.broadcast %cst_49 : f32 to vector<8x32xf32>
    %113 = arith.mulf %112, %111 : vector<8x32xf32>
    %cst_50 = arith.constant 5.000000e-01 : f32
    %114 = vector.broadcast %cst_50 : f32 to vector<8x32xf32>
    %115 = arith.addf %113, %114 : vector<8x32xf32>
    %116 = arith.mulf %105, %82 : vector<8x32xf32>
    %117 = arith.mulf %97, %107 : vector<8x32xf32>
    %118 = arith.addf %116, %117 : vector<8x32xf32>
    %119 = math.tanh %118 : vector<8x32xf32>
    %120 = arith.mulf %115, %119 : vector<8x32xf32>
    %c16_51 = arith.constant 16 : index
    %c0_52 = arith.constant 0 : index
    %121 = vector.load %arg8[%c16_51, %c0_52] : memref<64x32xf32, #tpu.memory_space<vmem>>, vector<8x32xf32>
    tpu.vector_store %arg8[%c16_51, %c0_52], %120 {strides = array<i32>} : memref<64x32xf32, #tpu.memory_space<vmem>>, vector<8x32xf32>,
    %c24 = arith.constant 24 : index
    %c0_53 = arith.constant 0 : index
    %122 = vector.load %arg7[%c24, %c0_53] : memref<64x128xf32, #tpu.memory_space<vmem>>, vector<8x128xf32>
    %123 = arith.truncf %120 : vector<8x32xf32> to vector<8x32xbf16>
    %cst_54 = arith.constant dense<0.000000e+00> : vector<8x128xf32>
    %124 = tpu.matmul %123, %4, %cst_54 {dimension_numbers = #tpu.dot_dimension_numbers<[1], [0], [0], [1], [0, 0, 1, 1], [], []>} : vector<8x32xbf16>, vector<32x128xbf16>, vector<8x128xf32> -> vector<8x128xf32>
    %125 = arith.addf %122, %124 : vector<8x128xf32>
    %126 = vector.extract_strided_slice %125 {offsets = [0, 0], sizes = [8, 32], strides = [1, 1]} : vector<8x128xf32> to vector<8x32xf32>
    %cst_55 = arith.constant 5.000000e-01 : f32
    %127 = vector.broadcast %cst_55 : f32 to vector<8x32xf32>
    %128 = arith.mulf %127, %126 : vector<8x32xf32>
    %129 = math.tanh %128 : vector<8x32xf32>
    %cst_56 = arith.constant 5.000000e-01 : f32
    %130 = vector.broadcast %cst_56 : f32 to vector<8x32xf32>
    %131 = arith.mulf %130, %129 : vector<8x32xf32>
    %cst_57 = arith.constant 5.000000e-01 : f32
    %132 = vector.broadcast %cst_57 : f32 to vector<8x32xf32>
    %133 = arith.addf %131, %132 : vector<8x32xf32>
    %134 = vector.extract_strided_slice %125 {offsets = [0, 32], sizes = [8, 32], strides = [1, 1]} : vector<8x128xf32> to vector<8x32xf32>
    %cst_58 = arith.constant 5.000000e-01 : f32
    %135 = vector.broadcast %cst_58 : f32 to vector<8x32xf32>
    %136 = arith.mulf %135, %134 : vector<8x32xf32>
    %137 = math.tanh %136 : vector<8x32xf32>
    %cst_59 = arith.constant 5.000000e-01 : f32
    %138 = vector.broadcast %cst_59 : f32 to vector<8x32xf32>
    %139 = arith.mulf %138, %137 : vector<8x32xf32>
    %cst_60 = arith.constant 5.000000e-01 : f32
    %140 = vector.broadcast %cst_60 : f32 to vector<8x32xf32>
    %141 = arith.addf %139, %140 : vector<8x32xf32>
    %142 = vector.extract_strided_slice %125 {offsets = [0, 64], sizes = [8, 32], strides = [1, 1]} : vector<8x128xf32> to vector<8x32xf32>
    %143 = math.tanh %142 : vector<8x32xf32>
    %144 = vector.extract_strided_slice %125 {offsets = [0, 96], sizes = [8, 32], strides = [1, 1]} : vector<8x128xf32> to vector<8x32xf32>
    %cst_61 = arith.constant 5.000000e-01 : f32
    %145 = vector.broadcast %cst_61 : f32 to vector<8x32xf32>
    %146 = arith.mulf %145, %144 : vector<8x32xf32>
    %147 = math.tanh %146 : vector<8x32xf32>
    %cst_62 = arith.constant 5.000000e-01 : f32
    %148 = vector.broadcast %cst_62 : f32 to vector<8x32xf32>
    %149 = arith.mulf %148, %147 : vector<8x32xf32>
    %cst_63 = arith.constant 5.000000e-01 : f32
    %150 = vector.broadcast %cst_63 : f32 to vector<8x32xf32>
    %151 = arith.addf %149, %150 : vector<8x32xf32>
    %152 = arith.mulf %141, %118 : vector<8x32xf32>
    %153 = arith.mulf %133, %143 : vector<8x32xf32>
    %154 = arith.addf %152, %153 : vector<8x32xf32>
    %155 = math.tanh %154 : vector<8x32xf32>
    %156 = arith.mulf %151, %155 : vector<8x32xf32>
    %c24_64 = arith.constant 24 : index
    %c0_65 = arith.constant 0 : index
    %157 = vector.load %arg8[%c24_64, %c0_65] : memref<64x32xf32, #tpu.memory_space<vmem>>, vector<8x32xf32>
    tpu.vector_store %arg8[%c24_64, %c0_65], %156 {strides = array<i32>} : memref<64x32xf32, #tpu.memory_space<vmem>>, vector<8x32xf32>,
    %c32 = arith.constant 32 : index
    %c0_66 = arith.constant 0 : index
    %158 = vector.load %arg7[%c32, %c0_66] : memref<64x128xf32, #tpu.memory_space<vmem>>, vector<8x128xf32>
    %159 = arith.truncf %156 : vector<8x32xf32> to vector<8x32xbf16>
    %cst_67 = arith.constant dense<0.000000e+00> : vector<8x128xf32>
    %160 = tpu.matmul %159, %4, %cst_67 {dimension_numbers = #tpu.dot_dimension_numbers<[1], [0], [0], [1], [0, 0, 1, 1], [], []>} : vector<8x32xbf16>, vector<32x128xbf16>, vector<8x128xf32> -> vector<8x128xf32>
    %161 = arith.addf %158, %160 : vector<8x128xf32>
    %162 = vector.extract_strided_slice %161 {offsets = [0, 0], sizes = [8, 32], strides = [1, 1]} : vector<8x128xf32> to vector<8x32xf32>
    %cst_68 = arith.constant 5.000000e-01 : f32
    %163 = vector.broadcast %cst_68 : f32 to vector<8x32xf32>
    %164 = arith.mulf %163, %162 : vector<8x32xf32>
    %165 = math.tanh %164 : vector<8x32xf32>
    %cst_69 = arith.constant 5.000000e-01 : f32
    %166 = vector.broadcast %cst_69 : f32 to vector<8x32xf32>
    %167 = arith.mulf %166, %165 : vector<8x32xf32>
    %cst_70 = arith.constant 5.000000e-01 : f32
    %168 = vector.broadcast %cst_70 : f32 to vector<8x32xf32>
    %169 = arith.addf %167, %168 : vector<8x32xf32>
    %170 = vector.extract_strided_slice %161 {offsets = [0, 32], sizes = [8, 32], strides = [1, 1]} : vector<8x128xf32> to vector<8x32xf32>
    %cst_71 = arith.constant 5.000000e-01 : f32
    %171 = vector.broadcast %cst_71 : f32 to vector<8x32xf32>
    %172 = arith.mulf %171, %170 : vector<8x32xf32>
    %173 = math.tanh %172 : vector<8x32xf32>
    %cst_72 = arith.constant 5.000000e-01 : f32
    %174 = vector.broadcast %cst_72 : f32 to vector<8x32xf32>
    %175 = arith.mulf %174, %173 : vector<8x32xf32>
    %cst_73 = arith.constant 5.000000e-01 : f32
    %176 = vector.broadcast %cst_73 : f32 to vector<8x32xf32>
    %177 = arith.addf %175, %176 : vector<8x32xf32>
    %178 = vector.extract_strided_slice %161 {offsets = [0, 64], sizes = [8, 32], strides = [1, 1]} : vector<8x128xf32> to vector<8x32xf32>
    %179 = math.tanh %178 : vector<8x32xf32>
    %180 = vector.extract_strided_slice %161 {offsets = [0, 96], sizes = [8, 32], strides = [1, 1]} : vector<8x128xf32> to vector<8x32xf32>
    %cst_74 = arith.constant 5.000000e-01 : f32
    %181 = vector.broadcast %cst_74 : f32 to vector<8x32xf32>
    %182 = arith.mulf %181, %180 : vector<8x32xf32>
    %183 = math.tanh %182 : vector<8x32xf32>
    %cst_75 = arith.constant 5.000000e-01 : f32
    %184 = vector.broadcast %cst_75 : f32 to vector<8x32xf32>
    %185 = arith.mulf %184, %183 : vector<8x32xf32>
    %cst_76 = arith.constant 5.000000e-01 : f32
    %186 = vector.broadcast %cst_76 : f32 to vector<8x32xf32>
    %187 = arith.addf %185, %186 : vector<8x32xf32>
    %188 = arith.mulf %177, %154 : vector<8x32xf32>
    %189 = arith.mulf %169, %179 : vector<8x32xf32>
    %190 = arith.addf %188, %189 : vector<8x32xf32>
    %191 = math.tanh %190 : vector<8x32xf32>
    %192 = arith.mulf %187, %191 : vector<8x32xf32>
    %c32_77 = arith.constant 32 : index
    %c0_78 = arith.constant 0 : index
    %193 = vector.load %arg8[%c32_77, %c0_78] : memref<64x32xf32, #tpu.memory_space<vmem>>, vector<8x32xf32>
    tpu.vector_store %arg8[%c32_77, %c0_78], %192 {strides = array<i32>} : memref<64x32xf32, #tpu.memory_space<vmem>>, vector<8x32xf32>,
    %c40 = arith.constant 40 : index
    %c0_79 = arith.constant 0 : index
    %194 = vector.load %arg7[%c40, %c0_79] : memref<64x128xf32, #tpu.memory_space<vmem>>, vector<8x128xf32>
    %195 = arith.truncf %192 : vector<8x32xf32> to vector<8x32xbf16>
    %cst_80 = arith.constant dense<0.000000e+00> : vector<8x128xf32>
    %196 = tpu.matmul %195, %4, %cst_80 {dimension_numbers = #tpu.dot_dimension_numbers<[1], [0], [0], [1], [0, 0, 1, 1], [], []>} : vector<8x32xbf16>, vector<32x128xbf16>, vector<8x128xf32> -> vector<8x128xf32>
    %197 = arith.addf %194, %196 : vector<8x128xf32>
    %198 = vector.extract_strided_slice %197 {offsets = [0, 0], sizes = [8, 32], strides = [1, 1]} : vector<8x128xf32> to vector<8x32xf32>
    %cst_81 = arith.constant 5.000000e-01 : f32
    %199 = vector.broadcast %cst_81 : f32 to vector<8x32xf32>
    %200 = arith.mulf %199, %198 : vector<8x32xf32>
    %201 = math.tanh %200 : vector<8x32xf32>
    %cst_82 = arith.constant 5.000000e-01 : f32
    %202 = vector.broadcast %cst_82 : f32 to vector<8x32xf32>
    %203 = arith.mulf %202, %201 : vector<8x32xf32>
    %cst_83 = arith.constant 5.000000e-01 : f32
    %204 = vector.broadcast %cst_83 : f32 to vector<8x32xf32>
    %205 = arith.addf %203, %204 : vector<8x32xf32>
    %206 = vector.extract_strided_slice %197 {offsets = [0, 32], sizes = [8, 32], strides = [1, 1]} : vector<8x128xf32> to vector<8x32xf32>
    %cst_84 = arith.constant 5.000000e-01 : f32
    %207 = vector.broadcast %cst_84 : f32 to vector<8x32xf32>
    %208 = arith.mulf %207, %206 : vector<8x32xf32>
    %209 = math.tanh %208 : vector<8x32xf32>
    %cst_85 = arith.constant 5.000000e-01 : f32
    %210 = vector.broadcast %cst_85 : f32 to vector<8x32xf32>
    %211 = arith.mulf %210, %209 : vector<8x32xf32>
    %cst_86 = arith.constant 5.000000e-01 : f32
    %212 = vector.broadcast %cst_86 : f32 to vector<8x32xf32>
    %213 = arith.addf %211, %212 : vector<8x32xf32>
    %214 = vector.extract_strided_slice %197 {offsets = [0, 64], sizes = [8, 32], strides = [1, 1]} : vector<8x128xf32> to vector<8x32xf32>
    %215 = math.tanh %214 : vector<8x32xf32>
    %216 = vector.extract_strided_slice %197 {offsets = [0, 96], sizes = [8, 32], strides = [1, 1]} : vector<8x128xf32> to vector<8x32xf32>
    %cst_87 = arith.constant 5.000000e-01 : f32
    %217 = vector.broadcast %cst_87 : f32 to vector<8x32xf32>
    %218 = arith.mulf %217, %216 : vector<8x32xf32>
    %219 = math.tanh %218 : vector<8x32xf32>
    %cst_88 = arith.constant 5.000000e-01 : f32
    %220 = vector.broadcast %cst_88 : f32 to vector<8x32xf32>
    %221 = arith.mulf %220, %219 : vector<8x32xf32>
    %cst_89 = arith.constant 5.000000e-01 : f32
    %222 = vector.broadcast %cst_89 : f32 to vector<8x32xf32>
    %223 = arith.addf %221, %222 : vector<8x32xf32>
    %224 = arith.mulf %213, %190 : vector<8x32xf32>
    %225 = arith.mulf %205, %215 : vector<8x32xf32>
    %226 = arith.addf %224, %225 : vector<8x32xf32>
    %227 = math.tanh %226 : vector<8x32xf32>
    %228 = arith.mulf %223, %227 : vector<8x32xf32>
    %c40_90 = arith.constant 40 : index
    %c0_91 = arith.constant 0 : index
    %229 = vector.load %arg8[%c40_90, %c0_91] : memref<64x32xf32, #tpu.memory_space<vmem>>, vector<8x32xf32>
    tpu.vector_store %arg8[%c40_90, %c0_91], %228 {strides = array<i32>} : memref<64x32xf32, #tpu.memory_space<vmem>>, vector<8x32xf32>,
    %c48 = arith.constant 48 : index
    %c0_92 = arith.constant 0 : index
    %230 = vector.load %arg7[%c48, %c0_92] : memref<64x128xf32, #tpu.memory_space<vmem>>, vector<8x128xf32>
    %231 = arith.truncf %228 : vector<8x32xf32> to vector<8x32xbf16>
    %cst_93 = arith.constant dense<0.000000e+00> : vector<8x128xf32>
    %232 = tpu.matmul %231, %4, %cst_93 {dimension_numbers = #tpu.dot_dimension_numbers<[1], [0], [0], [1], [0, 0, 1, 1], [], []>} : vector<8x32xbf16>, vector<32x128xbf16>, vector<8x128xf32> -> vector<8x128xf32>
    %233 = arith.addf %230, %232 : vector<8x128xf32>
    %234 = vector.extract_strided_slice %233 {offsets = [0, 0], sizes = [8, 32], strides = [1, 1]} : vector<8x128xf32> to vector<8x32xf32>
    %cst_94 = arith.constant 5.000000e-01 : f32
    %235 = vector.broadcast %cst_94 : f32 to vector<8x32xf32>
    %236 = arith.mulf %235, %234 : vector<8x32xf32>
    %237 = math.tanh %236 : vector<8x32xf32>
    %cst_95 = arith.constant 5.000000e-01 : f32
    %238 = vector.broadcast %cst_95 : f32 to vector<8x32xf32>
    %239 = arith.mulf %238, %237 : vector<8x32xf32>
    %cst_96 = arith.constant 5.000000e-01 : f32
    %240 = vector.broadcast %cst_96 : f32 to vector<8x32xf32>
    %241 = arith.addf %239, %240 : vector<8x32xf32>
    %242 = vector.extract_strided_slice %233 {offsets = [0, 32], sizes = [8, 32], strides = [1, 1]} : vector<8x128xf32> to vector<8x32xf32>
    %cst_97 = arith.constant 5.000000e-01 : f32
    %243 = vector.broadcast %cst_97 : f32 to vector<8x32xf32>
    %244 = arith.mulf %243, %242 : vector<8x32xf32>
    %245 = math.tanh %244 : vector<8x32xf32>
    %cst_98 = arith.constant 5.000000e-01 : f32
    %246 = vector.broadcast %cst_98 : f32 to vector<8x32xf32>
    %247 = arith.mulf %246, %245 : vector<8x32xf32>
    %cst_99 = arith.constant 5.000000e-01 : f32
    %248 = vector.broadcast %cst_99 : f32 to vector<8x32xf32>
    %249 = arith.addf %247, %248 : vector<8x32xf32>
    %250 = vector.extract_strided_slice %233 {offsets = [0, 64], sizes = [8, 32], strides = [1, 1]} : vector<8x128xf32> to vector<8x32xf32>
    %251 = math.tanh %250 : vector<8x32xf32>
    %252 = vector.extract_strided_slice %233 {offsets = [0, 96], sizes = [8, 32], strides = [1, 1]} : vector<8x128xf32> to vector<8x32xf32>
    %cst_100 = arith.constant 5.000000e-01 : f32
    %253 = vector.broadcast %cst_100 : f32 to vector<8x32xf32>
    %254 = arith.mulf %253, %252 : vector<8x32xf32>
    %255 = math.tanh %254 : vector<8x32xf32>
    %cst_101 = arith.constant 5.000000e-01 : f32
    %256 = vector.broadcast %cst_101 : f32 to vector<8x32xf32>
    %257 = arith.mulf %256, %255 : vector<8x32xf32>
    %cst_102 = arith.constant 5.000000e-01 : f32
    %258 = vector.broadcast %cst_102 : f32 to vector<8x32xf32>
    %259 = arith.addf %257, %258 : vector<8x32xf32>
    %260 = arith.mulf %249, %226 : vector<8x32xf32>
    %261 = arith.mulf %241, %251 : vector<8x32xf32>
    %262 = arith.addf %260, %261 : vector<8x32xf32>
    %263 = math.tanh %262 : vector<8x32xf32>
    %264 = arith.mulf %259, %263 : vector<8x32xf32>
    %c48_103 = arith.constant 48 : index
    %c0_104 = arith.constant 0 : index
    %265 = vector.load %arg8[%c48_103, %c0_104] : memref<64x32xf32, #tpu.memory_space<vmem>>, vector<8x32xf32>
    tpu.vector_store %arg8[%c48_103, %c0_104], %264 {strides = array<i32>} : memref<64x32xf32, #tpu.memory_space<vmem>>, vector<8x32xf32>,
    %c56 = arith.constant 56 : index
    %c0_105 = arith.constant 0 : index
    %266 = vector.load %arg7[%c56, %c0_105] : memref<64x128xf32, #tpu.memory_space<vmem>>, vector<8x128xf32>
    %267 = arith.truncf %264 : vector<8x32xf32> to vector<8x32xbf16>
    %cst_106 = arith.constant dense<0.000000e+00> : vector<8x128xf32>
    %268 = tpu.matmul %267, %4, %cst_106 {dimension_numbers = #tpu.dot_dimension_numbers<[1], [0], [0], [1], [0, 0, 1, 1], [], []>} : vector<8x32xbf16>, vector<32x128xbf16>, vector<8x128xf32> -> vector<8x128xf32>
    %269 = arith.addf %266, %268 : vector<8x128xf32>
    %270 = vector.extract_strided_slice %269 {offsets = [0, 0], sizes = [8, 32], strides = [1, 1]} : vector<8x128xf32> to vector<8x32xf32>
    %cst_107 = arith.constant 5.000000e-01 : f32
    %271 = vector.broadcast %cst_107 : f32 to vector<8x32xf32>
    %272 = arith.mulf %271, %270 : vector<8x32xf32>
    %273 = math.tanh %272 : vector<8x32xf32>
    %cst_108 = arith.constant 5.000000e-01 : f32
    %274 = vector.broadcast %cst_108 : f32 to vector<8x32xf32>
    %275 = arith.mulf %274, %273 : vector<8x32xf32>
    %cst_109 = arith.constant 5.000000e-01 : f32
    %276 = vector.broadcast %cst_109 : f32 to vector<8x32xf32>
    %277 = arith.addf %275, %276 : vector<8x32xf32>
    %278 = vector.extract_strided_slice %269 {offsets = [0, 32], sizes = [8, 32], strides = [1, 1]} : vector<8x128xf32> to vector<8x32xf32>
    %cst_110 = arith.constant 5.000000e-01 : f32
    %279 = vector.broadcast %cst_110 : f32 to vector<8x32xf32>
    %280 = arith.mulf %279, %278 : vector<8x32xf32>
    %281 = math.tanh %280 : vector<8x32xf32>
    %cst_111 = arith.constant 5.000000e-01 : f32
    %282 = vector.broadcast %cst_111 : f32 to vector<8x32xf32>
    %283 = arith.mulf %282, %281 : vector<8x32xf32>
    %cst_112 = arith.constant 5.000000e-01 : f32
    %284 = vector.broadcast %cst_112 : f32 to vector<8x32xf32>
    %285 = arith.addf %283, %284 : vector<8x32xf32>
    %286 = vector.extract_strided_slice %269 {offsets = [0, 64], sizes = [8, 32], strides = [1, 1]} : vector<8x128xf32> to vector<8x32xf32>
    %287 = math.tanh %286 : vector<8x32xf32>
    %288 = vector.extract_strided_slice %269 {offsets = [0, 96], sizes = [8, 32], strides = [1, 1]} : vector<8x128xf32> to vector<8x32xf32>
    %cst_113 = arith.constant 5.000000e-01 : f32
    %289 = vector.broadcast %cst_113 : f32 to vector<8x32xf32>
    %290 = arith.mulf %289, %288 : vector<8x32xf32>
    %291 = math.tanh %290 : vector<8x32xf32>
    %cst_114 = arith.constant 5.000000e-01 : f32
    %292 = vector.broadcast %cst_114 : f32 to vector<8x32xf32>
    %293 = arith.mulf %292, %291 : vector<8x32xf32>
    %cst_115 = arith.constant 5.000000e-01 : f32
    %294 = vector.broadcast %cst_115 : f32 to vector<8x32xf32>
    %295 = arith.addf %293, %294 : vector<8x32xf32>
    %296 = arith.mulf %285, %262 : vector<8x32xf32>
    %297 = arith.mulf %277, %287 : vector<8x32xf32>
    %298 = arith.addf %296, %297 : vector<8x32xf32>
    %299 = math.tanh %298 : vector<8x32xf32>
    %300 = arith.mulf %295, %299 : vector<8x32xf32>
    %c56_116 = arith.constant 56 : index
    %c0_117 = arith.constant 0 : index
    %301 = vector.load %arg8[%c56_116, %c0_117] : memref<64x32xf32, #tpu.memory_space<vmem>>, vector<8x32xf32>
    tpu.vector_store %arg8[%c56_116, %c0_117], %300 {strides = array<i32>} : memref<64x32xf32, #tpu.memory_space<vmem>>, vector<8x32xf32>,
    %c2 = arith.constant 2 : index
    %c0_118 = arith.constant 0 : index
    %c0_119 = arith.constant 0 : index
    %302 = vector.load %arg2[%c2, %c0_118, %c0_119] : memref<4x128x128xbf16, #tpu.memory_space<vmem>>, vector<1x128x128xbf16>
    %303 = vector.shape_cast %302 : vector<1x128x128xbf16> to vector<128x128xbf16>
    %c3 = arith.constant 3 : index
    %c0_120 = arith.constant 0 : index
    %c0_121 = arith.constant 0 : index
    %304 = vector.load %arg2[%c3, %c0_120, %c0_121] : memref<4x128x128xbf16, #tpu.memory_space<vmem>>, vector<1x128x128xbf16>
    %305 = vector.shape_cast %304 : vector<1x128x128xbf16> to vector<128x128xbf16>
    %306 = vector.extract_strided_slice %305 {offsets = [0, 0], sizes = [32, 128], strides = [1, 1]} : vector<128x128xbf16> to vector<32x128xbf16>
    %c1_122 = arith.constant 1 : index
    %c0_123 = arith.constant 0 : index
    %c0_124 = arith.constant 0 : index
    %307 = vector.load %arg3[%c1_122, %c0_123, %c0_124] : memref<2x1x128xf32, #tpu.memory_space<vmem>>, vector<1x1x128xf32>
    %308 = vector.shape_cast %307 : vector<1x1x128xf32> to vector<1x128xf32>
    %c0_125 = arith.constant 0 : index
    %c0_126 = arith.constant 0 : index
    %309 = vector.load %arg8[%c0_125, %c0_126] : memref<64x32xf32, #tpu.memory_space<vmem>>, vector<64x32xf32>
    %310 = arith.truncf %309 : vector<64x32xf32> to vector<64x32xbf16>
    %311 = vector.extract_strided_slice %303 {offsets = [0, 0], sizes = [32, 128], strides = [1, 1]} : vector<128x128xbf16> to vector<32x128xbf16>
    %cst_127 = arith.constant dense<0.000000e+00> : vector<64x128xf32>
    %312 = tpu.matmul %310, %311, %cst_127 {dimension_numbers = #tpu.dot_dimension_numbers<[1], [0], [0], [1], [0, 0, 1, 1], [], []>} : vector<64x32xbf16>, vector<32x128xbf16>, vector<64x128xf32> -> vector<64x128xf32>
    %313 = vector.broadcast %308 : vector<1x128xf32> to vector<64x128xf32>
    %314 = arith.addf %312, %313 : vector<64x128xf32>
    %c0_128 = arith.constant 0 : index
    %c0_129 = arith.constant 0 : index
    %315 = vector.load %arg7[%c0_128, %c0_129] : memref<64x128xf32, #tpu.memory_space<vmem>>, vector<64x128xf32>
    tpu.vector_store %arg7[%c0_128, %c0_129], %314 {strides = array<i32>} : memref<64x128xf32, #tpu.memory_space<vmem>>, vector<64x128xf32>,
    %cst_130 = arith.constant 0.000000e+00 : f32
    %316 = vector.broadcast %cst_130 : f32 to vector<8x32xf32>
    %cst_131 = arith.constant 0.000000e+00 : f32
    %317 = vector.broadcast %cst_131 : f32 to vector<8x32xf32>
    %c0_132 = arith.constant 0 : index
    %c0_133 = arith.constant 0 : index
    %318 = vector.load %arg7[%c0_132, %c0_133] : memref<64x128xf32, #tpu.memory_space<vmem>>, vector<8x128xf32>
    %319 = arith.truncf %316 : vector<8x32xf32> to vector<8x32xbf16>
    %cst_134 = arith.constant dense<0.000000e+00> : vector<8x128xf32>
    %320 = tpu.matmul %319, %306, %cst_134 {dimension_numbers = #tpu.dot_dimension_numbers<[1], [0], [0], [1], [0, 0, 1, 1], [], []>} : vector<8x32xbf16>, vector<32x128xbf16>, vector<8x128xf32> -> vector<8x128xf32>
    %321 = arith.addf %318, %320 : vector<8x128xf32>
    %322 = vector.extract_strided_slice %321 {offsets = [0, 0], sizes = [8, 32], strides = [1, 1]} : vector<8x128xf32> to vector<8x32xf32>
    %cst_135 = arith.constant 5.000000e-01 : f32
    %323 = vector.broadcast %cst_135 : f32 to vector<8x32xf32>
    %324 = arith.mulf %323, %322 : vector<8x32xf32>
    %325 = math.tanh %324 : vector<8x32xf32>
    %cst_136 = arith.constant 5.000000e-01 : f32
    %326 = vector.broadcast %cst_136 : f32 to vector<8x32xf32>
    %327 = arith.mulf %326, %325 : vector<8x32xf32>
    %cst_137 = arith.constant 5.000000e-01 : f32
    %328 = vector.broadcast %cst_137 : f32 to vector<8x32xf32>
    %329 = arith.addf %327, %328 : vector<8x32xf32>
    %330 = vector.extract_strided_slice %321 {offsets = [0, 32], sizes = [8, 32], strides = [1, 1]} : vector<8x128xf32> to vector<8x32xf32>
    %cst_138 = arith.constant 5.000000e-01 : f32
    %331 = vector.broadcast %cst_138 : f32 to vector<8x32xf32>
    %332 = arith.mulf %331, %330 : vector<8x32xf32>
    %333 = math.tanh %332 : vector<8x32xf32>
    %cst_139 = arith.constant 5.000000e-01 : f32
    %334 = vector.broadcast %cst_139 : f32 to vector<8x32xf32>
    %335 = arith.mulf %334, %333 : vector<8x32xf32>
    %cst_140 = arith.constant 5.000000e-01 : f32
    %336 = vector.broadcast %cst_140 : f32 to vector<8x32xf32>
    %337 = arith.addf %335, %336 : vector<8x32xf32>
    %338 = vector.extract_strided_slice %321 {offsets = [0, 64], sizes = [8, 32], strides = [1, 1]} : vector<8x128xf32> to vector<8x32xf32>
    %339 = math.tanh %338 : vector<8x32xf32>
    %340 = vector.extract_strided_slice %321 {offsets = [0, 96], sizes = [8, 32], strides = [1, 1]} : vector<8x128xf32> to vector<8x32xf32>
    %cst_141 = arith.constant 5.000000e-01 : f32
    %341 = vector.broadcast %cst_141 : f32 to vector<8x32xf32>
    %342 = arith.mulf %341, %340 : vector<8x32xf32>
    %343 = math.tanh %342 : vector<8x32xf32>
    %cst_142 = arith.constant 5.000000e-01 : f32
    %344 = vector.broadcast %cst_142 : f32 to vector<8x32xf32>
    %345 = arith.mulf %344, %343 : vector<8x32xf32>
    %cst_143 = arith.constant 5.000000e-01 : f32
    %346 = vector.broadcast %cst_143 : f32 to vector<8x32xf32>
    %347 = arith.addf %345, %346 : vector<8x32xf32>
    %348 = arith.mulf %337, %317 : vector<8x32xf32>
    %349 = arith.mulf %329, %339 : vector<8x32xf32>
    %350 = arith.addf %348, %349 : vector<8x32xf32>
    %351 = math.tanh %350 : vector<8x32xf32>
    %352 = arith.mulf %347, %351 : vector<8x32xf32>
    %c8_144 = arith.constant 8 : index
    %c0_145 = arith.constant 0 : index
    %353 = vector.load %arg7[%c8_144, %c0_145] : memref<64x128xf32, #tpu.memory_space<vmem>>, vector<8x128xf32>
    %354 = arith.truncf %352 : vector<8x32xf32> to vector<8x32xbf16>
    %cst_146 = arith.constant dense<0.000000e+00> : vector<8x128xf32>
    %355 = tpu.matmul %354, %306, %cst_146 {dimension_numbers = #tpu.dot_dimension_numbers<[1], [0], [0], [1], [0, 0, 1, 1], [], []>} : vector<8x32xbf16>, vector<32x128xbf16>, vector<8x128xf32> -> vector<8x128xf32>
    %356 = arith.addf %353, %355 : vector<8x128xf32>
    %357 = vector.extract_strided_slice %356 {offsets = [0, 0], sizes = [8, 32], strides = [1, 1]} : vector<8x128xf32> to vector<8x32xf32>
    %cst_147 = arith.constant 5.000000e-01 : f32
    %358 = vector.broadcast %cst_147 : f32 to vector<8x32xf32>
    %359 = arith.mulf %358, %357 : vector<8x32xf32>
    %360 = math.tanh %359 : vector<8x32xf32>
    %cst_148 = arith.constant 5.000000e-01 : f32
    %361 = vector.broadcast %cst_148 : f32 to vector<8x32xf32>
    %362 = arith.mulf %361, %360 : vector<8x32xf32>
    %cst_149 = arith.constant 5.000000e-01 : f32
    %363 = vector.broadcast %cst_149 : f32 to vector<8x32xf32>
    %364 = arith.addf %362, %363 : vector<8x32xf32>
    %365 = vector.extract_strided_slice %356 {offsets = [0, 32], sizes = [8, 32], strides = [1, 1]} : vector<8x128xf32> to vector<8x32xf32>
    %cst_150 = arith.constant 5.000000e-01 : f32
    %366 = vector.broadcast %cst_150 : f32 to vector<8x32xf32>
    %367 = arith.mulf %366, %365 : vector<8x32xf32>
    %368 = math.tanh %367 : vector<8x32xf32>
    %cst_151 = arith.constant 5.000000e-01 : f32
    %369 = vector.broadcast %cst_151 : f32 to vector<8x32xf32>
    %370 = arith.mulf %369, %368 : vector<8x32xf32>
    %cst_152 = arith.constant 5.000000e-01 : f32
    %371 = vector.broadcast %cst_152 : f32 to vector<8x32xf32>
    %372 = arith.addf %370, %371 : vector<8x32xf32>
    %373 = vector.extract_strided_slice %356 {offsets = [0, 64], sizes = [8, 32], strides = [1, 1]} : vector<8x128xf32> to vector<8x32xf32>
    %374 = math.tanh %373 : vector<8x32xf32>
    %375 = vector.extract_strided_slice %356 {offsets = [0, 96], sizes = [8, 32], strides = [1, 1]} : vector<8x128xf32> to vector<8x32xf32>
    %cst_153 = arith.constant 5.000000e-01 : f32
    %376 = vector.broadcast %cst_153 : f32 to vector<8x32xf32>
    %377 = arith.mulf %376, %375 : vector<8x32xf32>
    %378 = math.tanh %377 : vector<8x32xf32>
    %cst_154 = arith.constant 5.000000e-01 : f32
    %379 = vector.broadcast %cst_154 : f32 to vector<8x32xf32>
    %380 = arith.mulf %379, %378 : vector<8x32xf32>
    %cst_155 = arith.constant 5.000000e-01 : f32
    %381 = vector.broadcast %cst_155 : f32 to vector<8x32xf32>
    %382 = arith.addf %380, %381 : vector<8x32xf32>
    %383 = arith.mulf %372, %350 : vector<8x32xf32>
    %384 = arith.mulf %364, %374 : vector<8x32xf32>
    %385 = arith.addf %383, %384 : vector<8x32xf32>
    %386 = math.tanh %385 : vector<8x32xf32>
    %387 = arith.mulf %382, %386 : vector<8x32xf32>
    %c16_156 = arith.constant 16 : index
    %c0_157 = arith.constant 0 : index
    %388 = vector.load %arg7[%c16_156, %c0_157] : memref<64x128xf32, #tpu.memory_space<vmem>>, vector<8x128xf32>
    %389 = arith.truncf %387 : vector<8x32xf32> to vector<8x32xbf16>
    %cst_158 = arith.constant dense<0.000000e+00> : vector<8x128xf32>
    %390 = tpu.matmul %389, %306, %cst_158 {dimension_numbers = #tpu.dot_dimension_numbers<[1], [0], [0], [1], [0, 0, 1, 1], [], []>} : vector<8x32xbf16>, vector<32x128xbf16>, vector<8x128xf32> -> vector<8x128xf32>
    %391 = arith.addf %388, %390 : vector<8x128xf32>
    %392 = vector.extract_strided_slice %391 {offsets = [0, 0], sizes = [8, 32], strides = [1, 1]} : vector<8x128xf32> to vector<8x32xf32>
    %cst_159 = arith.constant 5.000000e-01 : f32
    %393 = vector.broadcast %cst_159 : f32 to vector<8x32xf32>
    %394 = arith.mulf %393, %392 : vector<8x32xf32>
    %395 = math.tanh %394 : vector<8x32xf32>
    %cst_160 = arith.constant 5.000000e-01 : f32
    %396 = vector.broadcast %cst_160 : f32 to vector<8x32xf32>
    %397 = arith.mulf %396, %395 : vector<8x32xf32>
    %cst_161 = arith.constant 5.000000e-01 : f32
    %398 = vector.broadcast %cst_161 : f32 to vector<8x32xf32>
    %399 = arith.addf %397, %398 : vector<8x32xf32>
    %400 = vector.extract_strided_slice %391 {offsets = [0, 32], sizes = [8, 32], strides = [1, 1]} : vector<8x128xf32> to vector<8x32xf32>
    %cst_162 = arith.constant 5.000000e-01 : f32
    %401 = vector.broadcast %cst_162 : f32 to vector<8x32xf32>
    %402 = arith.mulf %401, %400 : vector<8x32xf32>
    %403 = math.tanh %402 : vector<8x32xf32>
    %cst_163 = arith.constant 5.000000e-01 : f32
    %404 = vector.broadcast %cst_163 : f32 to vector<8x32xf32>
    %405 = arith.mulf %404, %403 : vector<8x32xf32>
    %cst_164 = arith.constant 5.000000e-01 : f32
    %406 = vector.broadcast %cst_164 : f32 to vector<8x32xf32>
    %407 = arith.addf %405, %406 : vector<8x32xf32>
    %408 = vector.extract_strided_slice %391 {offsets = [0, 64], sizes = [8, 32], strides = [1, 1]} : vector<8x128xf32> to vector<8x32xf32>
    %409 = math.tanh %408 : vector<8x32xf32>
    %410 = vector.extract_strided_slice %391 {offsets = [0, 96], sizes = [8, 32], strides = [1, 1]} : vector<8x128xf32> to vector<8x32xf32>
    %cst_165 = arith.constant 5.000000e-01 : f32
    %411 = vector.broadcast %cst_165 : f32 to vector<8x32xf32>
    %412 = arith.mulf %411, %410 : vector<8x32xf32>
    %413 = math.tanh %412 : vector<8x32xf32>
    %cst_166 = arith.constant 5.000000e-01 : f32
    %414 = vector.broadcast %cst_166 : f32 to vector<8x32xf32>
    %415 = arith.mulf %414, %413 : vector<8x32xf32>
    %cst_167 = arith.constant 5.000000e-01 : f32
    %416 = vector.broadcast %cst_167 : f32 to vector<8x32xf32>
    %417 = arith.addf %415, %416 : vector<8x32xf32>
    %418 = arith.mulf %407, %385 : vector<8x32xf32>
    %419 = arith.mulf %399, %409 : vector<8x32xf32>
    %420 = arith.addf %418, %419 : vector<8x32xf32>
    %421 = math.tanh %420 : vector<8x32xf32>
    %422 = arith.mulf %417, %421 : vector<8x32xf32>
    %c24_168 = arith.constant 24 : index
    %c0_169 = arith.constant 0 : index
    %423 = vector.load %arg7[%c24_168, %c0_169] : memref<64x128xf32, #tpu.memory_space<vmem>>, vector<8x128xf32>
    %424 = arith.truncf %422 : vector<8x32xf32> to vector<8x32xbf16>
    %cst_170 = arith.constant dense<0.000000e+00> : vector<8x128xf32>
    %425 = tpu.matmul %424, %306, %cst_170 {dimension_numbers = #tpu.dot_dimension_numbers<[1], [0], [0], [1], [0, 0, 1, 1], [], []>} : vector<8x32xbf16>, vector<32x128xbf16>, vector<8x128xf32> -> vector<8x128xf32>
    %426 = arith.addf %423, %425 : vector<8x128xf32>
    %427 = vector.extract_strided_slice %426 {offsets = [0, 0], sizes = [8, 32], strides = [1, 1]} : vector<8x128xf32> to vector<8x32xf32>
    %cst_171 = arith.constant 5.000000e-01 : f32
    %428 = vector.broadcast %cst_171 : f32 to vector<8x32xf32>
    %429 = arith.mulf %428, %427 : vector<8x32xf32>
    %430 = math.tanh %429 : vector<8x32xf32>
    %cst_172 = arith.constant 5.000000e-01 : f32
    %431 = vector.broadcast %cst_172 : f32 to vector<8x32xf32>
    %432 = arith.mulf %431, %430 : vector<8x32xf32>
    %cst_173 = arith.constant 5.000000e-01 : f32
    %433 = vector.broadcast %cst_173 : f32 to vector<8x32xf32>
    %434 = arith.addf %432, %433 : vector<8x32xf32>
    %435 = vector.extract_strided_slice %426 {offsets = [0, 32], sizes = [8, 32], strides = [1, 1]} : vector<8x128xf32> to vector<8x32xf32>
    %cst_174 = arith.constant 5.000000e-01 : f32
    %436 = vector.broadcast %cst_174 : f32 to vector<8x32xf32>
    %437 = arith.mulf %436, %435 : vector<8x32xf32>
    %438 = math.tanh %437 : vector<8x32xf32>
    %cst_175 = arith.constant 5.000000e-01 : f32
    %439 = vector.broadcast %cst_175 : f32 to vector<8x32xf32>
    %440 = arith.mulf %439, %438 : vector<8x32xf32>
    %cst_176 = arith.constant 5.000000e-01 : f32
    %441 = vector.broadcast %cst_176 : f32 to vector<8x32xf32>
    %442 = arith.addf %440, %441 : vector<8x32xf32>
    %443 = vector.extract_strided_slice %426 {offsets = [0, 64], sizes = [8, 32], strides = [1, 1]} : vector<8x128xf32> to vector<8x32xf32>
    %444 = math.tanh %443 : vector<8x32xf32>
    %445 = vector.extract_strided_slice %426 {offsets = [0, 96], sizes = [8, 32], strides = [1, 1]} : vector<8x128xf32> to vector<8x32xf32>
    %cst_177 = arith.constant 5.000000e-01 : f32
    %446 = vector.broadcast %cst_177 : f32 to vector<8x32xf32>
    %447 = arith.mulf %446, %445 : vector<8x32xf32>
    %448 = math.tanh %447 : vector<8x32xf32>
    %cst_178 = arith.constant 5.000000e-01 : f32
    %449 = vector.broadcast %cst_178 : f32 to vector<8x32xf32>
    %450 = arith.mulf %449, %448 : vector<8x32xf32>
    %cst_179 = arith.constant 5.000000e-01 : f32
    %451 = vector.broadcast %cst_179 : f32 to vector<8x32xf32>
    %452 = arith.addf %450, %451 : vector<8x32xf32>
    %453 = arith.mulf %442, %420 : vector<8x32xf32>
    %454 = arith.mulf %434, %444 : vector<8x32xf32>
    %455 = arith.addf %453, %454 : vector<8x32xf32>
    %456 = math.tanh %455 : vector<8x32xf32>
    %457 = arith.mulf %452, %456 : vector<8x32xf32>
    %c32_180 = arith.constant 32 : index
    %c0_181 = arith.constant 0 : index
    %458 = vector.load %arg7[%c32_180, %c0_181] : memref<64x128xf32, #tpu.memory_space<vmem>>, vector<8x128xf32>
    %459 = arith.truncf %457 : vector<8x32xf32> to vector<8x32xbf16>
    %cst_182 = arith.constant dense<0.000000e+00> : vector<8x128xf32>
    %460 = tpu.matmul %459, %306, %cst_182 {dimension_numbers = #tpu.dot_dimension_numbers<[1], [0], [0], [1], [0, 0, 1, 1], [], []>} : vector<8x32xbf16>, vector<32x128xbf16>, vector<8x128xf32> -> vector<8x128xf32>
    %461 = arith.addf %458, %460 : vector<8x128xf32>
    %462 = vector.extract_strided_slice %461 {offsets = [0, 0], sizes = [8, 32], strides = [1, 1]} : vector<8x128xf32> to vector<8x32xf32>
    %cst_183 = arith.constant 5.000000e-01 : f32
    %463 = vector.broadcast %cst_183 : f32 to vector<8x32xf32>
    %464 = arith.mulf %463, %462 : vector<8x32xf32>
    %465 = math.tanh %464 : vector<8x32xf32>
    %cst_184 = arith.constant 5.000000e-01 : f32
    %466 = vector.broadcast %cst_184 : f32 to vector<8x32xf32>
    %467 = arith.mulf %466, %465 : vector<8x32xf32>
    %cst_185 = arith.constant 5.000000e-01 : f32
    %468 = vector.broadcast %cst_185 : f32 to vector<8x32xf32>
    %469 = arith.addf %467, %468 : vector<8x32xf32>
    %470 = vector.extract_strided_slice %461 {offsets = [0, 32], sizes = [8, 32], strides = [1, 1]} : vector<8x128xf32> to vector<8x32xf32>
    %cst_186 = arith.constant 5.000000e-01 : f32
    %471 = vector.broadcast %cst_186 : f32 to vector<8x32xf32>
    %472 = arith.mulf %471, %470 : vector<8x32xf32>
    %473 = math.tanh %472 : vector<8x32xf32>
    %cst_187 = arith.constant 5.000000e-01 : f32
    %474 = vector.broadcast %cst_187 : f32 to vector<8x32xf32>
    %475 = arith.mulf %474, %473 : vector<8x32xf32>
    %cst_188 = arith.constant 5.000000e-01 : f32
    %476 = vector.broadcast %cst_188 : f32 to vector<8x32xf32>
    %477 = arith.addf %475, %476 : vector<8x32xf32>
    %478 = vector.extract_strided_slice %461 {offsets = [0, 64], sizes = [8, 32], strides = [1, 1]} : vector<8x128xf32> to vector<8x32xf32>
    %479 = math.tanh %478 : vector<8x32xf32>
    %480 = vector.extract_strided_slice %461 {offsets = [0, 96], sizes = [8, 32], strides = [1, 1]} : vector<8x128xf32> to vector<8x32xf32>
    %cst_189 = arith.constant 5.000000e-01 : f32
    %481 = vector.broadcast %cst_189 : f32 to vector<8x32xf32>
    %482 = arith.mulf %481, %480 : vector<8x32xf32>
    %483 = math.tanh %482 : vector<8x32xf32>
    %cst_190 = arith.constant 5.000000e-01 : f32
    %484 = vector.broadcast %cst_190 : f32 to vector<8x32xf32>
    %485 = arith.mulf %484, %483 : vector<8x32xf32>
    %cst_191 = arith.constant 5.000000e-01 : f32
    %486 = vector.broadcast %cst_191 : f32 to vector<8x32xf32>
    %487 = arith.addf %485, %486 : vector<8x32xf32>
    %488 = arith.mulf %477, %455 : vector<8x32xf32>
    %489 = arith.mulf %469, %479 : vector<8x32xf32>
    %490 = arith.addf %488, %489 : vector<8x32xf32>
    %491 = math.tanh %490 : vector<8x32xf32>
    %492 = arith.mulf %487, %491 : vector<8x32xf32>
    %c40_192 = arith.constant 40 : index
    %c0_193 = arith.constant 0 : index
    %493 = vector.load %arg7[%c40_192, %c0_193] : memref<64x128xf32, #tpu.memory_space<vmem>>, vector<8x128xf32>
    %494 = arith.truncf %492 : vector<8x32xf32> to vector<8x32xbf16>
    %cst_194 = arith.constant dense<0.000000e+00> : vector<8x128xf32>
    %495 = tpu.matmul %494, %306, %cst_194 {dimension_numbers = #tpu.dot_dimension_numbers<[1], [0], [0], [1], [0, 0, 1, 1], [], []>} : vector<8x32xbf16>, vector<32x128xbf16>, vector<8x128xf32> -> vector<8x128xf32>
    %496 = arith.addf %493, %495 : vector<8x128xf32>
    %497 = vector.extract_strided_slice %496 {offsets = [0, 0], sizes = [8, 32], strides = [1, 1]} : vector<8x128xf32> to vector<8x32xf32>
    %cst_195 = arith.constant 5.000000e-01 : f32
    %498 = vector.broadcast %cst_195 : f32 to vector<8x32xf32>
    %499 = arith.mulf %498, %497 : vector<8x32xf32>
    %500 = math.tanh %499 : vector<8x32xf32>
    %cst_196 = arith.constant 5.000000e-01 : f32
    %501 = vector.broadcast %cst_196 : f32 to vector<8x32xf32>
    %502 = arith.mulf %501, %500 : vector<8x32xf32>
    %cst_197 = arith.constant 5.000000e-01 : f32
    %503 = vector.broadcast %cst_197 : f32 to vector<8x32xf32>
    %504 = arith.addf %502, %503 : vector<8x32xf32>
    %505 = vector.extract_strided_slice %496 {offsets = [0, 32], sizes = [8, 32], strides = [1, 1]} : vector<8x128xf32> to vector<8x32xf32>
    %cst_198 = arith.constant 5.000000e-01 : f32
    %506 = vector.broadcast %cst_198 : f32 to vector<8x32xf32>
    %507 = arith.mulf %506, %505 : vector<8x32xf32>
    %508 = math.tanh %507 : vector<8x32xf32>
    %cst_199 = arith.constant 5.000000e-01 : f32
    %509 = vector.broadcast %cst_199 : f32 to vector<8x32xf32>
    %510 = arith.mulf %509, %508 : vector<8x32xf32>
    %cst_200 = arith.constant 5.000000e-01 : f32
    %511 = vector.broadcast %cst_200 : f32 to vector<8x32xf32>
    %512 = arith.addf %510, %511 : vector<8x32xf32>
    %513 = vector.extract_strided_slice %496 {offsets = [0, 64], sizes = [8, 32], strides = [1, 1]} : vector<8x128xf32> to vector<8x32xf32>
    %514 = math.tanh %513 : vector<8x32xf32>
    %515 = vector.extract_strided_slice %496 {offsets = [0, 96], sizes = [8, 32], strides = [1, 1]} : vector<8x128xf32> to vector<8x32xf32>
    %cst_201 = arith.constant 5.000000e-01 : f32
    %516 = vector.broadcast %cst_201 : f32 to vector<8x32xf32>
    %517 = arith.mulf %516, %515 : vector<8x32xf32>
    %518 = math.tanh %517 : vector<8x32xf32>
    %cst_202 = arith.constant 5.000000e-01 : f32
    %519 = vector.broadcast %cst_202 : f32 to vector<8x32xf32>
    %520 = arith.mulf %519, %518 : vector<8x32xf32>
    %cst_203 = arith.constant 5.000000e-01 : f32
    %521 = vector.broadcast %cst_203 : f32 to vector<8x32xf32>
    %522 = arith.addf %520, %521 : vector<8x32xf32>
    %523 = arith.mulf %512, %490 : vector<8x32xf32>
    %524 = arith.mulf %504, %514 : vector<8x32xf32>
    %525 = arith.addf %523, %524 : vector<8x32xf32>
    %526 = math.tanh %525 : vector<8x32xf32>
    %527 = arith.mulf %522, %526 : vector<8x32xf32>
    %c48_204 = arith.constant 48 : index
    %c0_205 = arith.constant 0 : index
    %528 = vector.load %arg7[%c48_204, %c0_205] : memref<64x128xf32, #tpu.memory_space<vmem>>, vector<8x128xf32>
    %529 = arith.truncf %527 : vector<8x32xf32> to vector<8x32xbf16>
    %cst_206 = arith.constant dense<0.000000e+00> : vector<8x128xf32>
    %530 = tpu.matmul %529, %306, %cst_206 {dimension_numbers = #tpu.dot_dimension_numbers<[1], [0], [0], [1], [0, 0, 1, 1], [], []>} : vector<8x32xbf16>, vector<32x128xbf16>, vector<8x128xf32> -> vector<8x128xf32>
    %531 = arith.addf %528, %530 : vector<8x128xf32>
    %532 = vector.extract_strided_slice %531 {offsets = [0, 0], sizes = [8, 32], strides = [1, 1]} : vector<8x128xf32> to vector<8x32xf32>
    %cst_207 = arith.constant 5.000000e-01 : f32
    %533 = vector.broadcast %cst_207 : f32 to vector<8x32xf32>
    %534 = arith.mulf %533, %532 : vector<8x32xf32>
    %535 = math.tanh %534 : vector<8x32xf32>
    %cst_208 = arith.constant 5.000000e-01 : f32
    %536 = vector.broadcast %cst_208 : f32 to vector<8x32xf32>
    %537 = arith.mulf %536, %535 : vector<8x32xf32>
    %cst_209 = arith.constant 5.000000e-01 : f32
    %538 = vector.broadcast %cst_209 : f32 to vector<8x32xf32>
    %539 = arith.addf %537, %538 : vector<8x32xf32>
    %540 = vector.extract_strided_slice %531 {offsets = [0, 32], sizes = [8, 32], strides = [1, 1]} : vector<8x128xf32> to vector<8x32xf32>
    %cst_210 = arith.constant 5.000000e-01 : f32
    %541 = vector.broadcast %cst_210 : f32 to vector<8x32xf32>
    %542 = arith.mulf %541, %540 : vector<8x32xf32>
    %543 = math.tanh %542 : vector<8x32xf32>
    %cst_211 = arith.constant 5.000000e-01 : f32
    %544 = vector.broadcast %cst_211 : f32 to vector<8x32xf32>
    %545 = arith.mulf %544, %543 : vector<8x32xf32>
    %cst_212 = arith.constant 5.000000e-01 : f32
    %546 = vector.broadcast %cst_212 : f32 to vector<8x32xf32>
    %547 = arith.addf %545, %546 : vector<8x32xf32>
    %548 = vector.extract_strided_slice %531 {offsets = [0, 64], sizes = [8, 32], strides = [1, 1]} : vector<8x128xf32> to vector<8x32xf32>
    %549 = math.tanh %548 : vector<8x32xf32>
    %550 = vector.extract_strided_slice %531 {offsets = [0, 96], sizes = [8, 32], strides = [1, 1]} : vector<8x128xf32> to vector<8x32xf32>
    %cst_213 = arith.constant 5.000000e-01 : f32
    %551 = vector.broadcast %cst_213 : f32 to vector<8x32xf32>
    %552 = arith.mulf %551, %550 : vector<8x32xf32>
    %553 = math.tanh %552 : vector<8x32xf32>
    %cst_214 = arith.constant 5.000000e-01 : f32
    %554 = vector.broadcast %cst_214 : f32 to vector<8x32xf32>
    %555 = arith.mulf %554, %553 : vector<8x32xf32>
    %cst_215 = arith.constant 5.000000e-01 : f32
    %556 = vector.broadcast %cst_215 : f32 to vector<8x32xf32>
    %557 = arith.addf %555, %556 : vector<8x32xf32>
    %558 = arith.mulf %547, %525 : vector<8x32xf32>
    %559 = arith.mulf %539, %549 : vector<8x32xf32>
    %560 = arith.addf %558, %559 : vector<8x32xf32>
    %561 = math.tanh %560 : vector<8x32xf32>
    %562 = arith.mulf %557, %561 : vector<8x32xf32>
    %c56_216 = arith.constant 56 : index
    %c0_217 = arith.constant 0 : index
    %563 = vector.load %arg7[%c56_216, %c0_217] : memref<64x128xf32, #tpu.memory_space<vmem>>, vector<8x128xf32>
    %564 = arith.truncf %562 : vector<8x32xf32> to vector<8x32xbf16>
    %cst_218 = arith.constant dense<0.000000e+00> : vector<8x128xf32>
    %565 = tpu.matmul %564, %306, %cst_218 {dimension_numbers = #tpu.dot_dimension_numbers<[1], [0], [0], [1], [0, 0, 1, 1], [], []>} : vector<8x32xbf16>, vector<32x128xbf16>, vector<8x128xf32> -> vector<8x128xf32>
    %566 = arith.addf %563, %565 : vector<8x128xf32>
    %567 = vector.extract_strided_slice %566 {offsets = [0, 0], sizes = [8, 32], strides = [1, 1]} : vector<8x128xf32> to vector<8x32xf32>
    %cst_219 = arith.constant 5.000000e-01 : f32
    %568 = vector.broadcast %cst_219 : f32 to vector<8x32xf32>
    %569 = arith.mulf %568, %567 : vector<8x32xf32>
    %570 = math.tanh %569 : vector<8x32xf32>
    %cst_220 = arith.constant 5.000000e-01 : f32
    %571 = vector.broadcast %cst_220 : f32 to vector<8x32xf32>
    %572 = arith.mulf %571, %570 : vector<8x32xf32>
    %cst_221 = arith.constant 5.000000e-01 : f32
    %573 = vector.broadcast %cst_221 : f32 to vector<8x32xf32>
    %574 = arith.addf %572, %573 : vector<8x32xf32>
    %575 = vector.extract_strided_slice %566 {offsets = [0, 32], sizes = [8, 32], strides = [1, 1]} : vector<8x128xf32> to vector<8x32xf32>
    %cst_222 = arith.constant 5.000000e-01 : f32
    %576 = vector.broadcast %cst_222 : f32 to vector<8x32xf32>
    %577 = arith.mulf %576, %575 : vector<8x32xf32>
    %578 = math.tanh %577 : vector<8x32xf32>
    %cst_223 = arith.constant 5.000000e-01 : f32
    %579 = vector.broadcast %cst_223 : f32 to vector<8x32xf32>
    %580 = arith.mulf %579, %578 : vector<8x32xf32>
    %cst_224 = arith.constant 5.000000e-01 : f32
    %581 = vector.broadcast %cst_224 : f32 to vector<8x32xf32>
    %582 = arith.addf %580, %581 : vector<8x32xf32>
    %583 = vector.extract_strided_slice %566 {offsets = [0, 64], sizes = [8, 32], strides = [1, 1]} : vector<8x128xf32> to vector<8x32xf32>
    %584 = math.tanh %583 : vector<8x32xf32>
    %585 = vector.extract_strided_slice %566 {offsets = [0, 96], sizes = [8, 32], strides = [1, 1]} : vector<8x128xf32> to vector<8x32xf32>
    %cst_225 = arith.constant 5.000000e-01 : f32
    %586 = vector.broadcast %cst_225 : f32 to vector<8x32xf32>
    %587 = arith.mulf %586, %585 : vector<8x32xf32>
    %588 = math.tanh %587 : vector<8x32xf32>
    %cst_226 = arith.constant 5.000000e-01 : f32
    %589 = vector.broadcast %cst_226 : f32 to vector<8x32xf32>
    %590 = arith.mulf %589, %588 : vector<8x32xf32>
    %cst_227 = arith.constant 5.000000e-01 : f32
    %591 = vector.broadcast %cst_227 : f32 to vector<8x32xf32>
    %592 = arith.addf %590, %591 : vector<8x32xf32>
    %593 = arith.mulf %582, %560 : vector<8x32xf32>
    %594 = arith.mulf %574, %584 : vector<8x32xf32>
    %595 = arith.addf %593, %594 : vector<8x32xf32>
    %596 = math.tanh %595 : vector<8x32xf32>
    %597 = arith.mulf %592, %596 : vector<8x32xf32>
    %c0_228 = arith.constant 0 : index
    %c0_229 = arith.constant 0 : index
    %c0_230 = arith.constant 0 : index
    %598 = vector.load %arg4[%c0_228, %c0_229, %c0_230] : memref<5x128x128xbf16, #tpu.memory_space<vmem>>, vector<1x128x128xbf16>
    %599 = vector.shape_cast %598 : vector<1x128x128xbf16> to vector<128x128xbf16>
    %600 = vector.extract_strided_slice %599 {offsets = [0, 0], sizes = [32, 128], strides = [1, 1]} : vector<128x128xbf16> to vector<32x128xbf16>
    %c1_231 = arith.constant 1 : index
    %c0_232 = arith.constant 0 : index
    %c0_233 = arith.constant 0 : index
    %601 = vector.load %arg4[%c1_231, %c0_232, %c0_233] : memref<5x128x128xbf16, #tpu.memory_space<vmem>>, vector<1x128x128xbf16>
    %602 = vector.shape_cast %601 : vector<1x128x128xbf16> to vector<128x128xbf16>
    %c2_234 = arith.constant 2 : index
    %c0_235 = arith.constant 0 : index
    %c0_236 = arith.constant 0 : index
    %603 = vector.load %arg4[%c2_234, %c0_235, %c0_236] : memref<5x128x128xbf16, #tpu.memory_space<vmem>>, vector<1x128x128xbf16>
    %604 = vector.shape_cast %603 : vector<1x128x128xbf16> to vector<128x128xbf16>
    %c3_237 = arith.constant 3 : index
    %c0_238 = arith.constant 0 : index
    %c0_239 = arith.constant 0 : index
    %605 = vector.load %arg4[%c3_237, %c0_238, %c0_239] : memref<5x128x128xbf16, #tpu.memory_space<vmem>>, vector<1x128x128xbf16>
    %606 = vector.shape_cast %605 : vector<1x128x128xbf16> to vector<128x128xbf16>
    %c4 = arith.constant 4 : index
    %c0_240 = arith.constant 0 : index
    %c0_241 = arith.constant 0 : index
    %607 = vector.load %arg4[%c4, %c0_240, %c0_241] : memref<5x128x128xbf16, #tpu.memory_space<vmem>>, vector<1x128x128xbf16>
    %608 = vector.shape_cast %607 : vector<1x128x128xbf16> to vector<128x128xbf16>
    %c0_242 = arith.constant 0 : index
    %c0_243 = arith.constant 0 : index
    %c0_244 = arith.constant 0 : index
    %609 = vector.load %arg5[%c0_242, %c0_243, %c0_244] : memref<3x1x128xf32, #tpu.memory_space<vmem>>, vector<1x1x128xf32>
    %610 = vector.shape_cast %609 : vector<1x1x128xf32> to vector<1x128xf32>
    %c1_245 = arith.constant 1 : index
    %c0_246 = arith.constant 0 : index
    %c0_247 = arith.constant 0 : index
    %611 = vector.load %arg5[%c1_245, %c0_246, %c0_247] : memref<3x1x128xf32, #tpu.memory_space<vmem>>, vector<1x1x128xf32>
    %612 = vector.shape_cast %611 : vector<1x1x128xf32> to vector<1x128xf32>
    %c2_248 = arith.constant 2 : index
    %c0_249 = arith.constant 0 : index
    %c0_250 = arith.constant 0 : index
    %613 = vector.load %arg5[%c2_248, %c0_249, %c0_250] : memref<3x1x128xf32, #tpu.memory_space<vmem>>, vector<1x1x128xf32>
    %614 = vector.shape_cast %613 : vector<1x1x128xf32> to vector<1x128xf32>
    %615 = arith.truncf %597 : vector<8x32xf32> to vector<8x32xbf16>
    %cst_251 = arith.constant dense<0.000000e+00> : vector<8x128xf32>
    %616 = tpu.matmul %615, %600, %cst_251 {dimension_numbers = #tpu.dot_dimension_numbers<[1], [0], [0], [1], [0, 0, 1, 1], [], []>} : vector<8x32xbf16>, vector<32x128xbf16>, vector<8x128xf32> -> vector<8x128xf32>
    %c0_252 = arith.constant 0 : index
    %c0_253 = arith.constant 0 : index
    %617 = vector.load %arg1[%c0_252, %c0_253] : memref<8x128xbf16, #tpu.memory_space<vmem>>, vector<8x128xbf16>
    %cst_254 = arith.constant dense<0.000000e+00> : vector<8x128xf32>
    %618 = tpu.matmul %617, %602, %cst_254 {dimension_numbers = #tpu.dot_dimension_numbers<[1], [0], [0], [1], [0, 0, 1, 1], [], []>} : vector<8x128xbf16>, vector<128x128xbf16>, vector<8x128xf32> -> vector<8x128xf32>
    %619 = arith.addf %616, %618 : vector<8x128xf32>
    %620 = vector.broadcast %610 : vector<1x128xf32> to vector<8x128xf32>
    %621 = arith.addf %619, %620 : vector<8x128xf32>
    %cst_255 = arith.constant 0.000000e+00 : f32
    %622 = vector.broadcast %cst_255 : f32 to vector<8x128xf32>
    %623 = arith.maximumf %621, %622 : vector<8x128xf32>
    %624 = vector.extract_strided_slice %623 {offsets = [0, 0], sizes = [2, 128], strides = [1, 1]} : vector<8x128xf32> to vector<2x128xf32>
    %625 = arith.truncf %624 : vector<2x128xf32> to vector<2x128xbf16>
    %626 = vector.extract_strided_slice %623 {offsets = [2, 0], sizes = [2, 128], strides = [1, 1]} : vector<8x128xf32> to vector<2x128xf32>
    %627 = arith.truncf %626 : vector<2x128xf32> to vector<2x128xbf16>
    %cst_256 = arith.constant dense<0.000000e+00> : vector<2x128xf32>
    %628 = tpu.matmul %625, %604, %cst_256 {dimension_numbers = #tpu.dot_dimension_numbers<[1], [0], [0], [1], [0, 0, 1, 1], [], []>} : vector<2x128xbf16>, vector<128x128xbf16>, vector<2x128xf32> -> vector<2x128xf32>
    %cst_257 = arith.constant dense<0.000000e+00> : vector<2x128xf32>
    %629 = tpu.matmul %627, %606, %cst_257 {dimension_numbers = #tpu.dot_dimension_numbers<[1], [0], [0], [1], [0, 0, 1, 1], [], []>} : vector<2x128xbf16>, vector<128x128xbf16>, vector<2x128xf32> -> vector<2x128xf32>
    %630 = arith.addf %628, %629 : vector<2x128xf32>
    %631 = vector.broadcast %612 : vector<1x128xf32> to vector<2x128xf32>
    %632 = arith.addf %630, %631 : vector<2x128xf32>
    %cst_258 = arith.constant 0.000000e+00 : f32
    %633 = vector.broadcast %cst_258 : f32 to vector<2x128xf32>
    %634 = arith.maximumf %632, %633 : vector<2x128xf32>
    %635 = arith.truncf %634 : vector<2x128xf32> to vector<2x128xbf16>
    %cst_259 = arith.constant dense<0.000000e+00> : vector<2x128xf32>
    %636 = tpu.matmul %635, %608, %cst_259 {dimension_numbers = #tpu.dot_dimension_numbers<[1], [0], [0], [1], [0, 0, 1, 1], [], []>} : vector<2x128xbf16>, vector<128x128xbf16>, vector<2x128xf32> -> vector<2x128xf32>
    %637 = vector.broadcast %614 : vector<1x128xf32> to vector<2x128xf32>
    %638 = arith.addf %636, %637 : vector<2x128xf32>
    %c0_260 = arith.constant 0 : index
    %c0_261 = arith.constant 0 : index
    %639 = vector.load %arg6[%c0_260, %c0_261] : memref<2x128xf32, #tpu.memory_space<vmem>>, vector<2x128xf32>
    tpu.vector_store %arg6[%c0_260, %c0_261], %638 {strides = array<i32>} : memref<2x128xf32, #tpu.memory_space<vmem>>, vector<2x128xf32>,
    return
  }
}

</mosaic_0001>

<bundles_post_ra>
// kernel: tpu_custom_call.1
= control target key start
LH: loop header
LB: loop body
LE: loop exit
PB: predicated region body
PF: predicated region fallthrough
CT: control target
= control target key end

     0   :  { %11 = vsyncpa [#allocation5], 0  ;;  %s2303_s0 = inlined_call_operand.hbm [shape: bf16[64,128], index: 0, kind: input, shape index: {}]   ;;  %s2304_s1 = inlined_call_operand.hbm [shape: bf16[8,128], index: 1, kind: input, shape index: {}]   ;;  %s2305_s2 = inlined_call_operand.hbm [shape: bf16[4,128,128], index: 2, kind: input, shape index: {}]   ;;  %s2306_s3 = inlined_call_operand.hbm [shape: f32[2,1,128], index: 3, kind: input, shape index: {}]   ;;  %s2307_s4 = inlined_call_operand.hbm [shape: bf16[5,128,128], index: 4, kind: input, shape index: {}]   ;;  %s2308_s5 = inlined_call_operand.vmem [shape: f32[3,1,128], index: 5, kind: input, shape index: {}]   ;;  %s2309_s6 = inlined_call_operand.hbm [shape: f32[2,128], index: 6, kind: output, shape index: {}]  }
   0x1   :  { %12 = vsyncpa [#allocation8], 0 }
   0x2   :  { %13 = vsyncpa [#allocation11], 0  ;;  %s33_s23 = sshll.u32 %s2304_s1, 4  ;;  %s34_s23 = int_to_ptr.hbm [resolvable:$true] %s33_s23 }
   0x3   :  { %14 = vsyncpa [#allocation6], 0  ;;  %s2027_s24 = smov [#allocation7]   ;;  %s56_s28 = sshll.u32 %s2306_s3, 4  ;;  %s57_s28 = int_to_ptr.hbm [resolvable:$true] %s56_s28 }
   0x4   :  { %s35_s25 = sshll.u32 %s2027_s24, 4  ;;  %s2028_s29 = smov [#allocation10]   ;;  %s36_s25 = int_to_ptr.vmem [resolvable:$true] %s35_s25 }
   0x5   :  { %38 = dma.hbm_to_vmem [thread:$0]  %s34_s23, 64, %s36_s25, [#allocation8]  }
   0x6   :  { %s58_s30 = sshll.u32 %s2028_s29, 4  ;;  %s2029_s7 = smov 16   ;;  %s59_s30 = int_to_ptr.vmem [resolvable:$true] %s58_s30 }
   0x7   :  { %s2030_s8 = smov 1   ;;  %s19_s1 = sshll.u32 %s2303_s0, 4  ;;  %s20_s1 = int_to_ptr.hbm [resolvable:$true] %s19_s1 }
   0x8   :  { %64 = dma.hbm_to_vmem [thread:$0]  %s57_s28, 32, %s59_s30, [#allocation11], %s2029_s7, %s2029_s7, %s2030_s8  }
   0x9   :  { %s2031_s11 = smov [#allocation4]   ;;  %s43_s3 = sshll.u32 %s2305_s2, 4  ;;  %s44_s3 = int_to_ptr.hbm [resolvable:$true] %s43_s3 }
   0xa   :  { %s21_s12 = sshll.u32 %s2031_s11, 4  ;;  %s2032_s15 = smov 64   ;;  %s22_s12 = int_to_ptr.vmem [resolvable:$true] %s21_s12 }
   0xb   :  { %s2033_s16 = smov 4   ;;  %s2034_s17 = smov [#allocation9]  }
   0xc   :  { %27 = dma.hbm_to_vmem [thread:$0]  %s20_s1, 512, %s22_s12, [#allocation5], %s2032_s15, %s2032_s15, %s2033_s16  }
   0xd   :  { %s45_s18 = sshll.u32 %s2034_s17, 4  ;;  %s69_s0 = sshll.u32 %s2307_s4, 4  ;;  %s46_s18 = int_to_ptr.vmem [resolvable:$true] %s45_s18  ;;  %s70_s0 = int_to_ptr.hbm [resolvable:$true] %s69_s0 }
   0xe   :  { %51 = dma.hbm_to_vmem [thread:$0]  %s44_s3, 4096, %s46_s18, [#allocation8], %s2032_s15, %s2032_s15, %s2033_s16  }
   0xf   :  { %s2035_s21 = smov [#allocation12]  }
  0x10   :  { %s71_s22 = sshll.u32 %s2035_s21, 4  ;;  %s72_s22 = int_to_ptr.vmem [resolvable:$true] %s71_s22 }
  0x11   :  { %77 = dma.hbm_to_vmem [thread:$0]  %s70_s0, 5120, %s72_s22, [#allocation11], %s2032_s15, %s2032_s15, %s2033_s16  }
  0x12   :  { %2019 = dma.done.wait [#allocation5], 512  }
  0x13   :  { %2020 = vsyncadd [#allocation5], 4294966784 }
  0x14   :  { %2021 = dma.done.wait [#allocation8], 4160  }
  0x15   :  { %2022 = vsyncadd [#allocation8], 4294963136 }
  0x16   :  { %2023 = dma.done.wait [#allocation11], 5152  }
  0x17   :  { %2024 = vsyncadd [#allocation11], 4294962144  ;;  %v1717_v0 = vld [vmem:[#allocation9 + $0x38] sm:$0xff]  ;;  %v2095_v1 = vld [vmem:[#allocation9 + $0x48] sm:$0xff]  ;;  %v2036_v6 = vmov 0   ;;  %s2037_s2 = smov 32  }
  0x18   :  { %206 = vmatpush.bf16.msra.mxu0 %v1717_v0  ;;  %v1716_v2 = vld [vmem:[#allocation9 + $0x30] sm:$0xff]  ;;  %266 = vmatpush.bf16.msra.mxu3 %v2095_v1  ;;  %v1718_v3 = vld [vmem:[#allocation9 + $0x40] sm:$0xff]  ;;  %v1715_v4 = vld [vmem:[#allocation9 + $0x28] sm:$0xff]  ;;  %vm256_vm0 = vcmask 261120   ;;  %s2038_s28 = smov [#allocation13]   ;;  %s1469_s8 = sshll.u32 %s2309_s6, 4  ;;  %s1470_s8 = int_to_ptr.hbm [resolvable:$true] %s1469_s8 }
  0x19   :  { %315 = vmatpush.bf16.msra.mxu2 %v2095_v1  ;;  %413 = vmatpush.bf16.msra.mxu1 %v2095_v1  ;;  %v1714_v5 = vld [vmem:[#allocation9 + $0x20] sm:$0xff]  ;;  %v1713_v7 = vld [vmem:[#allocation9 + $0x18] sm:$0xff]  ;;  %v1712_v8 = vld [vmem:[#allocation9 + $0x10] sm:$0xff]  ;;  %s1467_s29 = sshll.u32 %s2038_s28, 4  ;;  %s1468_s29 = int_to_ptr.vmem [resolvable:$true] %s1467_s29 }
  0x1a   :  { %v1711_v9 = vld [vmem:[#allocation9 + $0x8] sm:$0xff]  ;;  %v1710_v10 = vld [vmem:[#allocation9] sm:$0xff] }
  0x1b   :  { %v1720_v11 = vld [vmem:[#allocation4] sm:$0xff]  ;;  %v1721_v49 = vld [vmem:[#allocation4 + $0x8] sm:$0xff] }
  0x1c   :  { %207 = vmatpush.bf16.msra.mxu0 %v1716_v2  ;;  %267 = vmatpush.bf16.msra.mxu3 %v1718_v3  ;;  %v2105_v14 = vld [vmem:[#allocation10] ss:$0 sm:$0xff] }
  0x1d   :  { %316 = vmatpush.bf16.msra.mxu2 %v1718_v3  ;;  %414 = vmatpush.bf16.msra.mxu1 %v1718_v3 }
  0x1f   :  { %268 = vmatmul.bf16.vlgmr.msra.gmra.mxu3 %v2036_v6 }
  0x20   :  { %364 = vmatpush.bf16.msrb.mxu3 %v2095_v1  ;;  %208 = vmatpush.bf16.msra.mxu0 %v1715_v4 }
  0x21   :  { %462 = vmatpush.bf16.msrb.mxu2 %v2095_v1  ;;  %560 = vmatpush.bf16.msrb.mxu1 %v2095_v1 }
  0x24   :  { %365 = vmatpush.bf16.msrb.mxu3 %v1718_v3  ;;  %209 = vmatpush.bf16.msra.mxu0 %v1714_v5 }
  0x25   :  { %463 = vmatpush.bf16.msrb.mxu2 %v1718_v3  ;;  %561 = vmatpush.bf16.msrb.mxu1 %v1718_v3 }
  0x28   :  { %511 = vmatpush.bf16.msra.mxu3 %v2095_v1  ;;  %210 = vmatpush.bf16.msra.mxu0 %v1713_v7 }
  0x2c   :  { %512 = vmatpush.bf16.msra.mxu3 %v1718_v3  ;;  %211 = vmatpush.bf16.msra.mxu0 %v1712_v8 }
  0x30   :  { %212 = vmatpush.bf16.msra.mxu0 %v1711_v9 }
  0x34   :  { %213 = vmatpush.bf16.msra.mxu0 %v1710_v10 }
  0x37   :  { %214 = vmatmul.bf16.vlgmr.msra.gmra.mxu0 %v1720_v11 }
  0x47   :  { %219 = vmatmul.bf16.gmra.mxu0 %v1721_v49 }
  0xa2   :  { %v269_v12 = vpop.f32.mrf.mxu3 }
  0xaa   :  { %v271_v13 = vpop.f32.mrf.mxu3 }
  0xb4   :  { %v215_v15 = vpop.f32.mrf.mxu0 }
  0xb5   :  { %v216_v16 = vadd.f32 %v2105_v14, %v215_v15 }
  0xb7   :  { %v273_v17 = vadd.f32 %v269_v12, %v216_v16 }
  0xb9   :  { %1779 = vtanh.f32 %v273_v17  ;;  %v274_v19 = vmul.f32 0.5, %v273_v17 }
  0xbb   :  { %1781 = vtanh.f32 %v274_v19 }
  0xbc   :  { %v217_v33 = vpop.f32.mrf.mxu0 }
  0xbd   :  { %v218_v34 = vadd.f32 %v2105_v14, %v217_v33 }
  0xbf   :  { %v1780_v18 = vpop.eup %1779 }
  0xc0   :  { %281 = vrot.lane.b32.xlu0 %v1780_v18, %s2032_s15 }
  0xc1   :  { %v1782_v20 = vpop.eup %1781 }
  0xc2   :  { %v276_v21 = vmul.f32 0.5, %v1782_v20 }
  0xc4   :  { %v277_v22 = vadd.f32 0.5, %v276_v21  ;;  %v220_v54 = vpop.f32.mrf.mxu0 }
  0xc5   :  { %v221_v55 = vadd.f32 %v2105_v14, %v220_v54 }
  0xc6   :  { %v279_v25 = vmul.f32 0.0, %v277_v22 }
  0xcc   :  { %v222_v11 = vpop.f32.mrf.mxu0 }
  0xcd   :  { %v223_v12 = vadd.f32 %v2105_v14, %v222_v11 }
 0x132   :  { %v282_v23 = vpop.permute.xlu0 %281 }
 0x133   :  { %v284_v24 = vmul.f32 %v282_v23, %v277_v22 }
 0x135   :  { %286 = vrot.lane.b32.xlu0 %v284_v24, %s2037_s2 }
 0x1a7   :  { %v287_v26 = vpop.permute.xlu0 %286 }
 0x1a8   :  { %v289_v27 = vadd.f32 %v287_v26, %v279_v25 }
 0x1aa   :  { %1783 = vtanh.f32 %v289_v27 }
 0x1b0   :  { %v1784_v28 = vpop.eup %1783 }
 0x1b1   :  { %292 = vrot.lane.b32.xlu1 %v1784_v28, %s2032_s15  ;;  %v1722_v28 = vld [vmem:[#allocation4 + $0x10] sm:$0xff] }
 0x1b2   :  { %224 = vmatmul.bf16.gmra.mxu0 %v1722_v28  ;;  %v2195_v28 = vld [vmem:[#allocation10 + $0x1] ss:$0 sm:$0xff] }
 0x223   :  { %v293_v29 = vpop.permute.xlu1 %292 }
 0x224   :  { %v2111_v30 = vmul.f32 %v293_v29, %v277_v22 }
 0x226   :  { %v302_v31 = vpack.c.bf16 %v2111_v30, %v2111_v30 }
 0x228   :  { %304 = vrot.lane.b32.xlu1 %v302_v31, %s2037_s2 }
 0x29a   :  { %v305_v32 = vpop.permute.xlu1 %304 }
 0x29b   :  { %1537 = vmatmul.msk.bf16.vlgmr.msra.gmra.mxu2 %vm256_vm0, %v305_v32 }
 0x29c   :  { %609 = vmatpush.bf16.msra.mxu2 %v2095_v1 }
 0x2a0   :  { %610 = vmatpush.bf16.msra.mxu2 %v1718_v3 }
 0x31e   :  { %v318_v35 = vpop.f32.mrf.mxu2 }
 0x31f   :  { %v322_v36 = vadd.f32 %v318_v35, %v218_v34  ;;  %v225_v34 = vpop.f32.mrf.mxu0 }
 0x320   :  { %v226_v35 = vadd.f32 %v2105_v14, %v225_v34 }
 0x321   :  { %1785 = vtanh.f32 %v322_v36  ;;  %v323_v39 = vmul.f32 0.5, %v322_v36 }
 0x323   :  { %1787 = vtanh.f32 %v323_v39 }
 0x326   :  { %v320_v37 = vpop.f32.mrf.mxu2 }
 0x327   :  { %v1786_v38 = vpop.eup %1785 }
 0x328   :  { %330 = vrot.lane.b32.xlu2 %v1786_v38, %s2032_s15 }
 0x329   :  { %v1788_v40 = vpop.eup %1787 }
 0x32a   :  { %v325_v41 = vmul.f32 0.5, %v1788_v40 }
 0x32c   :  { %v326_v42 = vadd.f32 0.5, %v325_v41 }
 0x32e   :  { %v328_v45 = vmul.f32 %v326_v42, %v289_v27 }
 0x382   :  { %v331_v43 = vpop.permute.xlu2 %330 }
 0x383   :  { %v333_v44 = vmul.f32 %v331_v43, %v326_v42 }
 0x385   :  { %335 = vrot.lane.b32.xlu2 %v333_v44, %s2037_s2 }
 0x3df   :  { %v336_v46 = vpop.permute.xlu2 %335 }
 0x3e0   :  { %v338_v47 = vadd.f32 %v336_v46, %v328_v45 }
 0x3e2   :  { %1789 = vtanh.f32 %v338_v47 }
 0x3e8   :  { %v1790_v48 = vpop.eup %1789 }
 0x3e9   :  { %341 = vrot.lane.b32.xlu0 %v1790_v48, %s2032_s15 }
 0x45b   :  { %v342_v50 = vpop.permute.xlu0 %341 }
 0x45c   :  { %v2122_v51 = vmul.f32 %v342_v50, %v326_v42 }
 0x45e   :  { %v351_v52 = vpack.c.bf16 %v2122_v51, %v2122_v51 }
 0x460   :  { %353 = vrot.lane.b32.xlu1 %v351_v52, %s2037_s2 }
 0x4d2   :  { %v354_v53 = vpop.permute.xlu1 %353 }
 0x4d3   :  { %1538 = vmatmul.msk.bf16.vlgmr.msrb.gmra.mxu3 %vm256_vm0, %v354_v53 }
 0x556   :  { %v367_v56 = vpop.f32.mrf.mxu3 }
 0x557   :  { %v371_v57 = vadd.f32 %v367_v56, %v221_v55  ;;  %v227_v55 = vpop.f32.mrf.mxu0 }
 0x558   :  { %v228_v56 = vadd.f32 %v2105_v14, %v227_v55 }
 0x559   :  { %1791 = vtanh.f32 %v371_v57  ;;  %v372_v60 = vmul.f32 0.5, %v371_v57 }
 0x55b   :  { %1793 = vtanh.f32 %v372_v60 }
 0x55e   :  { %v369_v58 = vpop.f32.mrf.mxu3 }
 0x55f   :  { %v1792_v59 = vpop.eup %1791 }
 0x560   :  { %379 = vrot.lane.b32.xlu2 %v1792_v59, %s2032_s15 }
 0x561   :  { %v1794_v61 = vpop.eup %1793 }
 0x562   :  { %v374_v62 = vmul.f32 0.5, %v1794_v61 }
 0x564   :  { %v375_v63 = vadd.f32 0.5, %v374_v62 }
 0x566   :  { %v377_v2 = vmul.f32 %v375_v63, %v338_v47 }
 0x5ba   :  { %v380_v0 = vpop.permute.xlu2 %379 }
 0x5bb   :  { %v382_v1 = vmul.f32 %v380_v0, %v375_v63 }
 0x5bd   :  { %384 = vrot.lane.b32.xlu0 %v382_v1, %s2037_s2 }
 0x62f   :  { %v385_v3 = vpop.permute.xlu0 %384 }
 0x630   :  { %v387_v4 = vadd.f32 %v385_v3, %v377_v2 }
 0x632   :  { %1795 = vtanh.f32 %v387_v4 }
 0x638   :  { %v1796_v5 = vpop.eup %1795 }
 0x639   :  { %390 = vrot.lane.b32.xlu1 %v1796_v5, %s2032_s15  ;;  %v1724_v5 = vld [vmem:[#allocation9 + $0x80] sm:$0xff] }
 0x6ab   :  { %v391_v7 = vpop.permute.xlu1 %390 }
 0x6ac   :  { %v2132_v8 = vmul.f32 %v391_v7, %v375_v63 }
 0x6ae   :  { %v400_v9 = vpack.c.bf16 %v2132_v8, %v2132_v8 }
 0x6b0   :  { %402 = vrot.lane.b32.xlu2 %v400_v9, %s2037_s2 }
 0x70a   :  { %v403_v10 = vpop.permute.xlu2 %402 }
 0x70b   :  { %1539 = vmatmul.msk.bf16.vlgmr.msra.gmra.mxu1 %vm256_vm0, %v403_v10 }
 0x788   :  { %v416_v13 = vpop.f32.mrf.mxu1 }
 0x789   :  { %v420_v15 = vadd.f32 %v416_v13, %v223_v12 }
 0x78b   :  { %1797 = vtanh.f32 %v420_v15  ;;  %v421_v18 = vmul.f32 0.5, %v420_v15 }
 0x78d   :  { %1799 = vtanh.f32 %v421_v18  ;;  %v1723_v18 = vld [vmem:[#allocation4 + $0x18] sm:$0xff] }
 0x78e   :  { %229 = vmatmul.bf16.gmra.mxu0 %v1723_v18 }
 0x790   :  { %v418_v16 = vpop.f32.mrf.mxu1 }
 0x791   :  { %v1798_v17 = vpop.eup %1797 }
 0x792   :  { %428 = vrot.lane.b32.xlu0 %v1798_v17, %s2032_s15 }
 0x793   :  { %v1800_v19 = vpop.eup %1799 }
 0x794   :  { %v423_v20 = vmul.f32 0.5, %v1800_v19  ;;  %v2177_v19 = vld [vmem:[#allocation9 + $0xc8] sm:$0xff] }
 0x795   :  { %751 = vmatpush.bf16.msra.mxu1 %v2177_v19  ;;  %1015 = vmatpush.bf16.msrb.mxu0 %v2177_v19 }
 0x796   :  { %v424_v21 = vadd.f32 0.5, %v423_v20  ;;  %v2180_v20 = vld [vmem:[#allocation9 + $0xc0] sm:$0xff] }
 0x798   :  { %v426_v24 = vmul.f32 %v424_v21, %v387_v4  ;;  %v1725_v4 = vld [vmem:[#allocation9 + $0x88] sm:$0xff] }
 0x799   :  { %701 = vmatpush.bf16.msrb.mxu3 %v1725_v4  ;;  %752 = vmatpush.bf16.msra.mxu1 %v2180_v20 }
 0x79a   :  { %1016 = vmatpush.bf16.msrb.mxu0 %v2180_v20 }
 0x79d   :  { %702 = vmatpush.bf16.msrb.mxu3 %v1724_v5 }
 0x804   :  { %v429_v22 = vpop.permute.xlu0 %428 }
 0x805   :  { %v431_v23 = vmul.f32 %v429_v22, %v424_v21 }
 0x807   :  { %433 = vrot.lane.b32.xlu1 %v431_v23, %s2037_s2 }
 0x80b   :  { %v230_v22 = vpop.f32.mrf.mxu0 }
 0x80c   :  { %v231_v23 = vadd.f32 %v2105_v14, %v230_v22 }
 0x879   :  { %v434_v25 = vpop.permute.xlu1 %433 }
 0x87a   :  { %v436_v26 = vadd.f32 %v434_v25, %v426_v24 }
 0x87c   :  { %1801 = vtanh.f32 %v436_v26 }
 0x882   :  { %v1802_v27 = vpop.eup %1801 }
 0x883   :  { %439 = vrot.lane.b32.xlu2 %v1802_v27, %s2032_s15 }
 0x8dd   :  { %v440_v29 = vpop.permute.xlu2 %439 }
 0x8de   :  { %v2142_v31 = vmul.f32 %v440_v29, %v424_v21 }
 0x8e0   :  { %v449_v32 = vpack.c.bf16 %v2142_v31, %v2142_v31 }
 0x8e2   :  { %451 = vrot.lane.b32.xlu0 %v449_v32, %s2037_s2 }
 0x954   :  { %v452_v33 = vpop.permute.xlu0 %451 }
 0x955   :  { %1540 = vmatmul.msk.bf16.vlgmr.msrb.gmra.mxu2 %vm256_vm0, %v452_v33 }
 0x956   :  { %795 = vmatpush.bf16.msrb.mxu2 %v2177_v19 }
 0x95a   :  { %796 = vmatpush.bf16.msrb.mxu2 %v2180_v20 }
 0x9d8   :  { %v465_v36 = vpop.f32.mrf.mxu2 }
 0x9d9   :  { %v469_v37 = vadd.f32 %v465_v36, %v226_v35 }
 0x9db   :  { %1803 = vtanh.f32 %v469_v37  ;;  %v470_v40 = vmul.f32 0.5, %v469_v37 }
 0x9dd   :  { %1805 = vtanh.f32 %v470_v40 }
 0x9e0   :  { %v467_v38 = vpop.f32.mrf.mxu2 }
 0x9e1   :  { %v1804_v39 = vpop.eup %1803 }
 0x9e2   :  { %477 = vrot.lane.b32.xlu1 %v1804_v39, %s2032_s15 }
 0x9e3   :  { %v1806_v41 = vpop.eup %1805 }
 0x9e4   :  { %v472_v42 = vmul.f32 0.5, %v1806_v41 }
 0x9e6   :  { %v473_v43 = vadd.f32 0.5, %v472_v42 }
 0x9e8   :  { %v475_v46 = vmul.f32 %v473_v43, %v436_v26 }
 0xa54   :  { %v478_v44 = vpop.permute.xlu1 %477 }
 0xa55   :  { %v480_v45 = vmul.f32 %v478_v44, %v473_v43 }
 0xa57   :  { %482 = vrot.lane.b32.xlu2 %v480_v45, %s2037_s2 }
 0xab1   :  { %v483_v47 = vpop.permute.xlu2 %482 }
 0xab2   :  { %v485_v48 = vadd.f32 %v483_v47, %v475_v46 }
 0xab4   :  { %1807 = vtanh.f32 %v485_v48 }
 0xaba   :  { %v1808_v49 = vpop.eup %1807 }
 0xabb   :  { %488 = vrot.lane.b32.xlu0 %v1808_v49, %s2032_s15 }
 0xb2d   :  { %v489_v50 = vpop.permute.xlu0 %488 }
 0xb2e   :  { %v2152_v52 = vmul.f32 %v489_v50, %v473_v43 }
 0xb30   :  { %v498_v53 = vpack.c.bf16 %v2152_v52, %v2152_v52 }
 0xb32   :  { %500 = vrot.lane.b32.xlu1 %v498_v53, %s2037_s2 }
 0xba4   :  { %v501_v54 = vpop.permute.xlu1 %500 }
 0xba5   :  { %1541 = vmatmul.msk.bf16.vlgmr.msra.gmra.mxu3 %vm256_vm0, %v501_v54 }
 0xc28   :  { %v514_v57 = vpop.f32.mrf.mxu3 }
 0xc29   :  { %v518_v58 = vadd.f32 %v514_v57, %v228_v56 }
 0xc2b   :  { %1809 = vtanh.f32 %v518_v58  ;;  %v519_v61 = vmul.f32 0.5, %v518_v58 }
 0xc2d   :  { %1811 = vtanh.f32 %v519_v61 }
 0xc30   :  { %v516_v59 = vpop.f32.mrf.mxu3 }
 0xc31   :  { %v1810_v60 = vpop.eup %1809 }
 0xc32   :  { %526 = vrot.lane.b32.xlu2 %v1810_v60, %s2032_s15 }
 0xc33   :  { %v1812_v62 = vpop.eup %1811 }
 0xc34   :  { %v521_v63 = vmul.f32 0.5, %v1812_v62 }
 0xc36   :  { %v522_v0 = vadd.f32 0.5, %v521_v63 }
 0xc3a   :  { %297 = vrot.lane.b32.xlu2 %v2111_v30, %s2037_s2  ;;  %v524_v30 = vmul.f32 %v522_v0, %v485_v48 }
 0xc8c   :  { %v527_v1 = vpop.permute.xlu2 %526 }
 0xc8d   :  { %v529_v2 = vmul.f32 %v527_v1, %v522_v0 }
 0xc8f   :  { %531 = vrot.lane.b32.xlu0 %v529_v2, %s2037_s2 }
 0xc94   :  { %v298_v3 = vpop.permute.xlu2 %297 }
 0xc95   :  { %300 = vst.msk [vmem:[#allocation3] sm:$0xff] %vm256_vm0, %v298_v3 }
 0xc97   :  { %346 = vrot.lane.b32.xlu0 %v2122_v51, %s2037_s2 }
 0xc9c   :  { %v656_v12 = vld [vmem:[#allocation3] sm:$0xff] }
 0xd01   :  { %v532_v7 = vpop.permute.xlu0 %531 }
 0xd02   :  { %v2166_v9 = vadd.f32 %v532_v7, %v524_v30 }
 0xd04   :  { %1813 = vtanh.f32 %v2166_v9 }
 0xd09   :  { %v347_v10 = vpop.permute.xlu0 %346 }
 0xd0a   :  { %v1814_v11 = vpop.eup %1813  ;;  %349 = vst.msk [vmem:[#allocation3 + $0x8] sm:$0xff] %vm256_vm0, %v347_v10 }
 0xd0b   :  { %537 = vrot.lane.b32.xlu1 %v1814_v11, %s2032_s15 }
 0xd11   :  { %v657_v13 = vld [vmem:[#allocation3 + $0x8] sm:$0xff] }
 0xd12   :  { %v664_v15 = vpack.c.bf16 %v657_v13, %v656_v12 }
 0xd14   :  { %1552 = vmatmul.msk.bf16.vlgmr.msrb.gmra.mxu3 %vm256_vm0, %v664_v15 }
 0xd7d   :  { %v538_v51 = vpop.permute.xlu1 %537 }
 0xd7e   :  { %v2172_v16 = vmul.f32 %v538_v51, %v522_v0 }
 0xd80   :  { %v547_v17 = vpack.c.bf16 %v2172_v16, %v2172_v16 }
 0xd82   :  { %549 = vrot.lane.b32.xlu1 %v547_v17, %s2037_s2 }
 0xd97   :  { %v704_v29 = vpop.f32.mrf.mxu3 }
 0xd98   :  { %v705_v32 = vadd.f32 %v2195_v28, %v704_v29 }
 0xd9f   :  { %v706_v4 = vpop.f32.mrf.mxu3 }
 0xda0   :  { %v707_v5 = vadd.f32 %v2195_v28, %v706_v4 }
 0xdf4   :  { %v550_v21 = vpop.permute.xlu1 %549 }
 0xdf5   :  { %1542 = vmatmul.msk.bf16.vlgmr.msrb.gmra.mxu1 %vm256_vm0, %v550_v21 }
 0xdf6   :  { %839 = vmatpush.bf16.msrb.mxu1 %v2177_v19 }
 0xdfa   :  { %840 = vmatpush.bf16.msrb.mxu1 %v2180_v20 }
 0xe05   :  { %753 = vmatmul.bf16.vlgmr.msra.gmra.mxu1 %v2036_v6 }
 0xe06   :  { %927 = vmatpush.bf16.msra.mxu1 %v2177_v19 }
 0xe0a   :  { %928 = vmatpush.bf16.msra.mxu1 %v2180_v20 }
 0xe72   :  { %v563_v24 = vpop.f32.mrf.mxu1 }
 0xe73   :  { %v567_v25 = vadd.f32 %v563_v24, %v231_v23 }
 0xe75   :  { %1815 = vtanh.f32 %v567_v25  ;;  %v568_v36 = vmul.f32 0.5, %v567_v25 }
 0xe7a   :  { %v565_v26 = vpop.f32.mrf.mxu1 }
 0xe7b   :  { %v1816_v27 = vpop.eup %1815 }
 0xe7c   :  { %575 = vrot.lane.b32.xlu2 %v1816_v27, %s2032_s15 }
 0xe82   :  { %v754_v6 = vpop.f32.mrf.mxu1 }
 0xe83   :  { %v758_v33 = vadd.f32 %v754_v6, %v705_v32 }
 0xe85   :  { %1817 = vtanh.f32 %v758_v33  ;;  %v759_v42 = vmul.f32 0.5, %v758_v33 }
 0xe86   :  { %1819 = vtanh.f32 %v568_v36 }
 0xe87   :  { %1821 = vtanh.f32 %v759_v42 }
 0xe8a   :  { %v756_v34 = vpop.f32.mrf.mxu1 }
 0xe8b   :  { %v1818_v35 = vpop.eup %1817 }
 0xe8c   :  { %766 = vrot.lane.b32.xlu0 %v1818_v35, %s2032_s15  ;;  %v1820_v37 = vpop.eup %1819 }
 0xe8d   :  { %v570_v38 = vmul.f32 0.5, %v1820_v37  ;;  %v1822_v43 = vpop.eup %1821 }
 0xe8e   :  { %v761_v44 = vmul.f32 0.5, %v1822_v43 }
 0xe8f   :  { %v571_v39 = vadd.f32 0.5, %v570_v38 }
 0xe90   :  { %v762_v45 = vadd.f32 0.5, %v761_v44 }
 0xe91   :  { %v573_v48 = vmul.f32 %v571_v39, %v2166_v9 }
 0xe92   :  { %v764_v54 = vmul.f32 0.0, %v762_v45 }
 0xed6   :  { %v576_v40 = vpop.permute.xlu2 %575 }
 0xed7   :  { %v578_v41 = vmul.f32 %v576_v40, %v571_v39 }
 0xed9   :  { %580 = vrot.lane.b32.xlu1 %v578_v41, %s2037_s2 }
 0xefe   :  { %v767_v46 = vpop.permute.xlu0 %766 }
 0xeff   :  { %v769_v47 = vmul.f32 %v767_v46, %v762_v45 }
 0xf01   :  { %771 = vrot.lane.b32.xlu2 %v769_v47, %s2037_s2 }
 0xf4b   :  { %v581_v49 = vpop.permute.xlu1 %580 }
 0xf4c   :  { %v2202_v50 = vadd.f32 %v581_v49, %v573_v48 }
 0xf4e   :  { %1823 = vtanh.f32 %v2202_v50 }
 0xf54   :  { %v1824_v53 = vpop.eup %1823 }
 0xf55   :  { %586 = vrot.lane.b32.xlu0 %v1824_v53, %s2032_s15 }
 0xf5b   :  { %v772_v55 = vpop.permute.xlu2 %771 }
 0xf5c   :  { %v774_v56 = vadd.f32 %v772_v55, %v764_v54 }
 0xf5e   :  { %1825 = vtanh.f32 %v774_v56 }
 0xf64   :  { %v1826_v57 = vpop.eup %1825 }
 0xf65   :  { %777 = vrot.lane.b32.xlu1 %v1826_v57, %s2032_s15 }
 0xfc7   :  { %v587_v58 = vpop.permute.xlu0 %586 }
 0xfc8   :  { %v2207_v59 = vmul.f32 %v587_v58, %v571_v39 }
 0xfca   :  { %v596_v60 = vpack.c.bf16 %v2207_v59, %v2207_v59 }
 0xfcc   :  { %598 = vrot.lane.b32.xlu2 %v596_v60, %s2037_s2 }
 0xfd7   :  { %v778_v61 = vpop.permute.xlu1 %777 }
 0xfd8   :  { %v780_v62 = vmul.f32 %v778_v61, %v762_v45 }
 0xfda   :  { %v782_v63 = vpack.c.bf16 %v780_v62, %v780_v62 }
 0xfdc   :  { %784 = vrot.lane.b32.xlu0 %v782_v63, %s2037_s2 }
0x1026   :  { %v599_v0 = vpop.permute.xlu2 %598 }
0x1027   :  { %1543 = vmatmul.msk.bf16.vlgmr.msra.gmra.mxu2 %vm256_vm0, %v599_v0 }
0x1028   :  { %883 = vmatpush.bf16.msra.mxu2 %v2177_v19 }
0x102c   :  { %884 = vmatpush.bf16.msra.mxu2 %v2180_v20 }
0x104e   :  { %v785_v1 = vpop.permute.xlu0 %784 }
0x104f   :  { %1564 = vmatmul.msk.bf16.vlgmr.msrb.gmra.mxu2 %vm256_vm0, %v785_v1 }
0x1050   :  { %971 = vmatpush.bf16.msrb.mxu2 %v2177_v19 }
0x1054   :  { %972 = vmatpush.bf16.msrb.mxu2 %v2180_v20 }
0x10aa   :  { %v2219_v2 = vpop.f32.mrf.mxu2 }
0x10b2   :  { %v614_v3 = vpop.f32.mrf.mxu2 }
0x10d2   :  { %v798_v30 = vpop.f32.mrf.mxu2 }
0x10d3   :  { %v802_v7 = vadd.f32 %v798_v30, %v707_v5 }
0x10d5   :  { %1827 = vtanh.f32 %v802_v7  ;;  %v803_v11 = vmul.f32 0.5, %v802_v7 }
0x10d7   :  { %1829 = vtanh.f32 %v803_v11 }
0x10da   :  { %v800_v9 = vpop.f32.mrf.mxu2 }
0x10db   :  { %v1828_v10 = vpop.eup %1827 }
0x10dc   :  { %810 = vrot.lane.b32.xlu1 %v1828_v10, %s2032_s15 }
0x10dd   :  { %v1830_v12 = vpop.eup %1829 }
0x10de   :  { %v805_v13 = vmul.f32 0.5, %v1830_v12 }
0x10e0   :  { %v806_v15 = vadd.f32 0.5, %v805_v13 }
0x10e2   :  { %v808_v21 = vmul.f32 %v806_v15, %v774_v56 }
0x10e4   :  { %395 = vrot.lane.b32.xlu1 %v2132_v8, %s2037_s2 }
0x114e   :  { %v811_v51 = vpop.permute.xlu1 %810 }
0x114f   :  { %v813_v17 = vmul.f32 %v811_v51, %v806_v15 }
0x1151   :  { %815 = vrot.lane.b32.xlu2 %v813_v17, %s2037_s2 }
0x1156   :  { %v396_v18 = vpop.permute.xlu1 %395 }
0x1157   :  { %398 = vst.msk [vmem:[#allocation3 + $0x10] sm:$0xff] %vm256_vm0, %v396_v18 }
0x1159   :  { %444 = vrot.lane.b32.xlu2 %v2142_v31, %s2037_s2 }
0x115e   :  { %v658_v25 = vld [vmem:[#allocation3 + $0x10] sm:$0xff] }
0x11ab   :  { %v816_v22 = vpop.permute.xlu2 %815 }
0x11ac   :  { %v818_v23 = vadd.f32 %v816_v22, %v808_v21 }
0x11ae   :  { %1831 = vtanh.f32 %v818_v23 }
0x11b3   :  { %v445_v8 = vpop.permute.xlu2 %444 }
0x11b4   :  { %v1832_v24 = vpop.eup %1831  ;;  %447 = vst.msk [vmem:[#allocation3 + $0x18] sm:$0xff] %vm256_vm0, %v445_v8 }
0x11b5   :  { %821 = vrot.lane.b32.xlu0 %v1832_v24, %s2032_s15 }
0x11bb   :  { %v659_v26 = vld [vmem:[#allocation3 + $0x18] sm:$0xff] }
0x11bc   :  { %v665_v27 = vpack.c.bf16 %v659_v26, %v658_v25  ;;  %v232_v26 = vpop.f32.mrf.mxu0 }
0x11be   :  { %1553 = vmatmul.msk.bf16.gmra.mxu3 %vm256_vm0, %v665_v27 }
0x1227   :  { %v822_v29 = vpop.permute.xlu0 %821 }
0x1228   :  { %v824_v32 = vmul.f32 %v822_v29, %v806_v15  ;;  %v233_v29 = vadd.f32 %v2105_v14, %v232_v26 }
0x122a   :  { %v826_v6 = vpack.c.bf16 %v824_v32, %v824_v32 }
0x122c   :  { %828 = vrot.lane.b32.xlu0 %v826_v6, %s2037_s2  ;;  %v616_v6 = vadd.f32 %v2219_v2, %v233_v29 }
0x1241   :  { %v709_v33 = vpop.f32.mrf.mxu3 }
0x1242   :  { %v710_v34 = vadd.f32 %v2195_v28, %v709_v33 }
0x1249   :  { %v711_v54 = vpop.f32.mrf.mxu3 }
0x124a   :  { %v712_v55 = vadd.f32 %v2195_v28, %v711_v54 }
0x129e   :  { %v829_v31 = vpop.permute.xlu0 %828 }
0x129f   :  { %1565 = vmatmul.msk.bf16.vlgmr.msrb.gmra.mxu1 %vm256_vm0, %v829_v31 }
0x12a0   :  { %1059 = vmatpush.bf16.msrb.mxu1 %v2177_v19 }
0x12a4   :  { %1060 = vmatpush.bf16.msrb.mxu1 %v2180_v20 }
0x131c   :  { %v842_v35 = vpop.f32.mrf.mxu1 }
0x131d   :  { %v846_v36 = vadd.f32 %v842_v35, %v710_v34 }
0x131f   :  { %1833 = vtanh.f32 %v846_v36  ;;  %v847_v39 = vmul.f32 0.5, %v846_v36 }
0x1321   :  { %1835 = vtanh.f32 %v847_v39  ;;  %v617_v39 = vmul.f32 0.5, %v616_v6 }
0x1324   :  { %v844_v37 = vpop.f32.mrf.mxu1 }
0x1325   :  { %v1834_v38 = vpop.eup %1833 }
0x1326   :  { %854 = vrot.lane.b32.xlu1 %v1834_v38, %s2032_s15 }
0x1327   :  { %v1836_v40 = vpop.eup %1835 }
0x1328   :  { %v849_v41 = vmul.f32 0.5, %v1836_v40 }
0x132a   :  { %v850_v42 = vadd.f32 0.5, %v849_v41 }
0x132c   :  { %v852_v19 = vmul.f32 %v850_v42, %v818_v23 }
0x1398   :  { %v855_v43 = vpop.permute.xlu1 %854 }
0x1399   :  { %v857_v44 = vmul.f32 %v855_v43, %v850_v42 }
0x139b   :  { %859 = vrot.lane.b32.xlu2 %v857_v44, %s2037_s2 }
0x13f5   :  { %v860_v20 = vpop.permute.xlu2 %859 }
0x13f6   :  { %v862_v45 = vadd.f32 %v860_v20, %v852_v19 }
0x13f8   :  { %1837 = vtanh.f32 %v862_v45 }
0x13fe   :  { %v1838_v46 = vpop.eup %1837 }
0x13ff   :  { %865 = vrot.lane.b32.xlu0 %v1838_v46, %s2032_s15 }
0x1471   :  { %v866_v47 = vpop.permute.xlu0 %865 }
0x1472   :  { %v868_v48 = vmul.f32 %v866_v47, %v850_v42 }
0x1474   :  { %v870_v49 = vpack.c.bf16 %v868_v48, %v868_v48 }
0x1476   :  { %872 = vrot.lane.b32.xlu1 %v870_v49, %s2037_s2 }
0x14e8   :  { %v873_v53 = vpop.permute.xlu1 %872 }
0x14e9   :  { %1566 = vmatmul.msk.bf16.vlgmr.msra.gmra.mxu2 %vm256_vm0, %v873_v53 }
0x156c   :  { %v886_v56 = vpop.f32.mrf.mxu2 }
0x156d   :  { %v890_v57 = vadd.f32 %v886_v56, %v712_v55 }
0x156f   :  { %1839 = vtanh.f32 %v890_v57  ;;  %v891_v61 = vmul.f32 0.5, %v890_v57 }
0x1571   :  { %1841 = vtanh.f32 %v891_v61 }
0x1574   :  { %v888_v58 = vpop.f32.mrf.mxu2 }
0x1575   :  { %v1840_v60 = vpop.eup %1839 }
0x1576   :  { %898 = vrot.lane.b32.xlu2 %v1840_v60, %s2032_s15 }
0x1577   :  { %v1842_v62 = vpop.eup %1841 }
0x1578   :  { %v893_v63 = vmul.f32 0.5, %v1842_v62 }
0x157a   :  { %v894_v0 = vadd.f32 0.5, %v893_v63 }
0x157c   :  { %v896_v5 = vmul.f32 %v894_v0, %v862_v45 }
0x157e   :  { %493 = vrot.lane.b32.xlu2 %v2152_v52, %s2037_s2 }
0x15d0   :  { %v899_v1 = vpop.permute.xlu2 %898 }
0x15d1   :  { %v901_v3 = vmul.f32 %v899_v1, %v894_v0 }
0x15d3   :  { %903 = vrot.lane.b32.xlu0 %v901_v3, %s2037_s2 }
0x15d8   :  { %v494_v4 = vpop.permute.xlu2 %493 }
0x15d9   :  { %496 = vst.msk [vmem:[#allocation3 + $0x20] sm:$0xff] %vm256_vm0, %v494_v4 }
0x15db   :  { %542 = vrot.lane.b32.xlu0 %v2172_v16, %s2037_s2 }
0x15e0   :  { %v660_v10 = vld [vmem:[#allocation3 + $0x20] sm:$0xff] }
0x1645   :  { %v904_v30 = vpop.permute.xlu0 %903 }
0x1646   :  { %v906_v7 = vadd.f32 %v904_v30, %v896_v5 }
0x1648   :  { %1843 = vtanh.f32 %v906_v7 }
0x164d   :  { %v543_v52 = vpop.permute.xlu0 %542 }
0x164e   :  { %v1844_v9 = vpop.eup %1843  ;;  %545 = vst.msk [vmem:[#allocation3 + $0x28] sm:$0xff] %vm256_vm0, %v543_v52 }
0x164f   :  { %909 = vrot.lane.b32.xlu1 %v1844_v9, %s2032_s15 }
0x1655   :  { %v661_v11 = vld [vmem:[#allocation3 + $0x28] sm:$0xff] }
0x1656   :  { %v666_v12 = vpack.c.bf16 %v661_v11, %v660_v10 }
0x1658   :  { %1554 = vmatmul.msk.bf16.gmra.mxu3 %vm256_vm0, %v666_v12 }
0x16c1   :  { %v910_v13 = vpop.permute.xlu1 %909 }
0x16c2   :  { %v912_v15 = vmul.f32 %v910_v13, %v894_v0 }
0x16c4   :  { %v914_v51 = vpack.c.bf16 %v912_v15, %v912_v15 }
0x16c6   :  { %916 = vrot.lane.b32.xlu1 %v914_v51, %s2037_s2 }
0x16db   :  { %v714_v17 = vpop.f32.mrf.mxu3 }
0x16dc   :  { %v715_v18 = vadd.f32 %v2195_v28, %v714_v17 }
0x16e3   :  { %v716_v45 = vpop.f32.mrf.mxu3 }
0x16e4   :  { %v717_v46 = vadd.f32 %v2195_v28, %v716_v45 }
0x1738   :  { %v917_v16 = vpop.permute.xlu1 %916 }
0x1739   :  { %1567 = vmatmul.msk.bf16.vlgmr.msra.gmra.mxu1 %vm256_vm0, %v917_v16 }
0x17b6   :  { %v930_v21 = vpop.f32.mrf.mxu1 }
0x17b7   :  { %v934_v22 = vadd.f32 %v930_v21, %v715_v18 }
0x17b9   :  { %1845 = vtanh.f32 %v934_v22  ;;  %v935_v24 = vmul.f32 0.5, %v934_v22 }
0x17bb   :  { %1847 = vtanh.f32 %v935_v24 }
0x17bc   :  { %1849 = vtanh.f32 %v616_v6 }
0x17be   :  { %v932_v23 = vpop.f32.mrf.mxu1 }
0x17bf   :  { %v1846_v8 = vpop.eup %1845 }
0x17c0   :  { %942 = vrot.lane.b32.xlu2 %v1846_v8, %s2032_s15 }
0x17c1   :  { %v1848_v25 = vpop.eup %1847 }
0x17c2   :  { %v937_v27 = vmul.f32 0.5, %v1848_v25  ;;  %v1850_v34 = vpop.eup %1849 }
0x17c4   :  { %v938_v32 = vadd.f32 0.5, %v937_v27 }
0x17c6   :  { %v940_v35 = vmul.f32 %v938_v32, %v906_v7 }
0x181a   :  { %v943_v31 = vpop.permute.xlu2 %942 }
0x181b   :  { %v945_v33 = vmul.f32 %v943_v31, %v938_v32 }
0x181d   :  { %947 = vrot.lane.b32.xlu0 %v945_v33, %s2037_s2 }
0x1825   :  { %624 = vrot.lane.b32.xlu0 %v1850_v34, %s2032_s15 }
0x188f   :  { %v948_v36 = vpop.permute.xlu0 %947 }
0x1890   :  { %v950_v37 = vadd.f32 %v948_v36, %v940_v35 }
0x1892   :  { %1851 = vtanh.f32 %v950_v37 }
0x1893   :  { %1853 = vtanh.f32 %v617_v39 }
0x1897   :  { %v625_v43 = vpop.permute.xlu0 %624 }
0x1898   :  { %v1852_v38 = vpop.eup %1851 }
0x1899   :  { %953 = vrot.lane.b32.xlu1 %v1852_v38, %s2032_s15  ;;  %v1854_v2 = vpop.eup %1853 }
0x189a   :  { %v619_v42 = vmul.f32 0.5, %v1854_v2 }
0x189c   :  { %v620_v44 = vadd.f32 0.5, %v619_v42 }
0x189e   :  { %v627_v19 = vmul.f32 %v625_v43, %v620_v44  ;;  %v622_v53 = vmul.f32 %v620_v44, %v2202_v50 }
0x190b   :  { %v954_v14 = vpop.permute.xlu1 %953 }
0x190c   :  { %v956_v40 = vmul.f32 %v954_v14, %v938_v32 }
0x190e   :  { %v958_v41 = vpack.c.bf16 %v956_v40, %v956_v40 }
0x1910   :  { %960 = vrot.lane.b32.xlu2 %v958_v41, %s2037_s2 }
0x1918   :  { %629 = vrot.lane.b32.xlu2 %v627_v19, %s2037_s2 }
0x196a   :  { %v961_v20 = vpop.permute.xlu2 %960 }
0x196b   :  { %1568 = vmatmul.msk.bf16.vlgmr.msrb.gmra.mxu2 %vm256_vm0, %v961_v20 }
0x1972   :  { %v630_v49 = vpop.permute.xlu2 %629 }
0x1973   :  { %v632_v54 = vadd.f32 %v630_v49, %v622_v53  ;;  %v1736_v49 = vld [vmem:[#allocation12 + $0x70] sm:$0xff]  ;;  %v1729_v53 = vld [vmem:[#allocation12 + $0x8] sm:$0xff] }
0x1974   :  { %1253 = vmatpush.bf16.msra.mxu2 %v1729_v53 }
0x19ee   :  { %v974_v47 = vpop.f32.mrf.mxu2 }
0x19ef   :  { %v978_v48 = vadd.f32 %v974_v47, %v717_v46 }
0x19f1   :  { %1855 = vtanh.f32 %v978_v48  ;;  %v979_v58 = vmul.f32 0.5, %v978_v48  ;;  %v1737_v48 = vld [vmem:[#allocation12 + $0x78] sm:$0xff] }
0x19f2   :  { %1857 = vtanh.f32 %v632_v54  ;;  %1216 = vmatpush.bf16.msra.mxu3 %v1737_v48  ;;  %v1728_v54 = vld [vmem:[#allocation12] sm:$0xff] }
0x19f3   :  { %1859 = vtanh.f32 %v979_v58  ;;  %1254 = vmatpush.bf16.msra.mxu2 %v1728_v54  ;;  %v1732_v58 = vld [vmem:[#allocation12 + $0x50] sm:$0xff] }
0x19f6   :  { %v976_v55 = vpop.f32.mrf.mxu2  ;;  %1217 = vmatpush.bf16.msra.mxu3 %v1736_v49 }
0x19f7   :  { %v1856_v56 = vpop.eup %1855  ;;  %v1735_v55 = vld [vmem:[#allocation12 + $0x68] sm:$0xff] }
0x19f8   :  { %986 = vrot.lane.b32.xlu1 %v1856_v56, %s2032_s15  ;;  %v1858_v57 = vpop.eup %1857  ;;  %v1734_v56 = vld [vmem:[#allocation12 + $0x60] sm:$0xff] }
0x19f9   :  { %v1860_v60 = vpop.eup %1859 }
0x19fa   :  { %v981_v61 = vmul.f32 0.5, %v1860_v60  ;;  %1218 = vmatpush.bf16.msra.mxu3 %v1735_v55  ;;  %v1731_v60 = vld [vmem:[#allocation12 + $0x48] sm:$0xff] }
0x19fc   :  { %v982_v62 = vadd.f32 0.5, %v981_v61  ;;  %v1730_v61 = vld [vmem:[#allocation12 + $0x40] sm:$0xff] }
0x19fe   :  { %v984_v3 = vmul.f32 %v982_v62, %v950_v37  ;;  %1219 = vmatpush.bf16.msra.mxu3 %v1734_v56 }
0x1a00   :  { %635 = vrot.lane.b32.xlu1 %v1858_v57, %s2032_s15  ;;  %v1733_v57 = vld [vmem:[#allocation12 + $0x58] sm:$0xff] }
0x1a02   :  { %1220 = vmatpush.bf16.msra.mxu3 %v1733_v57 }
0x1a06   :  { %1221 = vmatpush.bf16.msra.mxu3 %v1732_v58 }
0x1a0a   :  { %1222 = vmatpush.bf16.msra.mxu3 %v1731_v60 }
0x1a0e   :  { %1223 = vmatpush.bf16.msra.mxu3 %v1730_v61 }
0x1a6a   :  { %v987_v63 = vpop.permute.xlu1 %986 }
0x1a6b   :  { %v989_v0 = vmul.f32 %v987_v63, %v982_v62 }
0x1a6d   :  { %991 = vrot.lane.b32.xlu0 %v989_v0, %s2037_s2 }
0x1a72   :  { %v636_v1 = vpop.permute.xlu1 %635 }
0x1a73   :  { %v638_v50 = vmul.f32 %v636_v1, %v620_v44  ;;  %v1167_v1 = vld [vmem:[#allocation7] sm:$0xf] }
0x1a75   :  { %640 = vrot.lane.b32.xlu1 %v638_v50, %s2037_s2  ;;  %591 = vrot.lane.b32.xlu0 %v2207_v59, %s2037_s2  ;;  %v1745_v50 = vld [vmem:[#allocation12 + $0xb8] sm:$0xff] }
0x1a76   :  { %1378 = vmatpush.bf16.msra.mxu1 %v1745_v50 }
0x1adf   :  { %v992_v4 = vpop.permute.xlu0 %991 }
0x1ae0   :  { %v994_v5 = vadd.f32 %v992_v4, %v984_v3  ;;  %v1753_v3 = vld [vmem:[#allocation12 + $0xf8] sm:$0xff]  ;;  %v1744_v4 = vld [vmem:[#allocation12 + $0xb0] sm:$0xff] }
0x1ae1   :  { %1317 = vmatpush.bf16.msra.mxu0 %v1753_v3  ;;  %1379 = vmatpush.bf16.msra.mxu1 %v1744_v4 }
0x1ae2   :  { %1861 = vtanh.f32 %v994_v5 }
0x1ae7   :  { %v641_v30 = vpop.permute.xlu1 %640  ;;  %v592_v7 = vpop.permute.xlu0 %591 }
0x1ae8   :  { %v1862_v52 = vpop.eup %1861  ;;  %643 = vst.msk [vmem:[#allocation3 + $0x38] sm:$0xff] %vm256_vm0, %v641_v30  ;;  %v1743_v30 = vld [vmem:[#allocation12 + $0xa8] sm:$0xff] }
0x1ae9   :  { %594 = vst.msk [vmem:[#allocation3 + $0x30] sm:$0xff] %vm256_vm0, %v592_v7  ;;  %997 = vrot.lane.b32.xlu2 %v1862_v52, %s2032_s15  ;;  %v1751_v7 = vld [vmem:[#allocation12 + $0xe8] sm:$0xff]  ;;  %1380 = vmatpush.bf16.msra.mxu1 %v1743_v30  ;;  %v1742_v52 = vld [vmem:[#allocation12 + $0xa0] sm:$0xff] }
0x1aed   :  { %1381 = vmatpush.bf16.msra.mxu1 %v1742_v52 }
0x1aef   :  { %v663_v9 = vld [vmem:[#allocation3 + $0x38] sm:$0xff] }
0x1af0   :  { %v662_v10 = vld [vmem:[#allocation3 + $0x30] sm:$0xff] }
0x1af1   :  { %v667_v11 = vpack.c.bf16 %v663_v9, %v662_v10  ;;  %v1750_v9 = vld [vmem:[#allocation12 + $0xe0] sm:$0xff]  ;;  %v1741_v10 = vld [vmem:[#allocation12 + $0x98] sm:$0xff] }
0x1af2   :  { %1382 = vmatpush.bf16.msra.mxu1 %v1741_v10 }
0x1af3   :  { %1555 = vmatmul.msk.bf16.gmra.mxu3 %vm256_vm0, %v667_v11  ;;  %v1749_v11 = vld [vmem:[#allocation12 + $0xd8] sm:$0xff] }
0x1b03   :  { %1224 = vmatmul.bf16.vlgmr.msra.gmra.mxu3 %v1167_v1 }
0x1b43   :  { %v998_v12 = vpop.permute.xlu2 %997 }
0x1b44   :  { %v1000_v59 = vmul.f32 %v998_v12, %v982_v62  ;;  %v1740_v12 = vld [vmem:[#allocation12 + $0x90] sm:$0xff] }
0x1b45   :  { %1383 = vmatpush.bf16.msra.mxu1 %v1740_v12 }
0x1b46   :  { %v1002_v13 = vpack.c.bf16 %v1000_v59, %v1000_v59 }
0x1b48   :  { %1004 = vrot.lane.b32.xlu2 %v1002_v13, %s2037_s2 }
0x1b76   :  { %v719_v51 = vpop.f32.mrf.mxu3 }
0x1b77   :  { %v720_v16 = vadd.f32 %v2195_v28, %v719_v51  ;;  %v1748_v51 = vld [vmem:[#allocation12 + $0xd0] sm:$0xff] }
0x1b7e   :  { %v721_v37 = vpop.f32.mrf.mxu3 }
0x1b7f   :  { %v722_v38 = vadd.f32 %v2195_v28, %v721_v37  ;;  %v1754_v37 = vld [vmem:[#allocation12 + $0x100] sm:$0xff] }
0x1b86   :  { %v1225_v13 = vpop.f32.mrf.mxu3 }
0x1ba2   :  { %v1005_v15 = vpop.permute.xlu2 %1004 }
0x1ba3   :  { %1569 = vmatmul.msk.bf16.vlgmr.msrb.gmra.mxu0 %vm256_vm0, %v1005_v15  ;;  %v1227_v15 = vpop.f32.mrf.mxu3 }
0x1c20   :  { %v1018_v17 = vpop.f32.mrf.mxu0 }
0x1c21   :  { %v1022_v18 = vadd.f32 %v1018_v17, %v720_v16  ;;  %v1739_v16 = vld [vmem:[#allocation12 + $0x88] sm:$0xff] }
0x1c22   :  { %1384 = vmatpush.bf16.msra.mxu1 %v1739_v16  ;;  %v1747_v17 = vld [vmem:[#allocation12 + $0xc8] sm:$0xff] }
0x1c23   :  { %1863 = vtanh.f32 %v1022_v18  ;;  %v1023_v23 = vmul.f32 0.5, %v1022_v18  ;;  %v1738_v18 = vld [vmem:[#allocation12 + $0x80] sm:$0xff] }
0x1c25   :  { %1865 = vtanh.f32 %v1023_v23  ;;  %v1760_v23 = vld [vmem:[#allocation12 + $0x130] sm:$0xff] }
0x1c26   :  { %1385 = vmatpush.bf16.msra.mxu1 %v1738_v18 }
0x1c28   :  { %v1020_v21 = vpop.f32.mrf.mxu0 }
0x1c29   :  { %v1864_v22 = vpop.eup %1863  ;;  %v1746_v21 = vld [vmem:[#allocation12 + $0xc0] sm:$0xff] }
0x1c2a   :  { %1030 = vrot.lane.b32.xlu0 %v1864_v22, %s2032_s15  ;;  %v1761_v22 = vld [vmem:[#allocation12 + $0x138] sm:$0xff] }
0x1c2b   :  { %v1866_v8 = vpop.eup %1865  ;;  %1448 = vmatpush.bf16.msrb.mxu2 %v1761_v22 }
0x1c2c   :  { %v1025_v24 = vmul.f32 0.5, %v1866_v8  ;;  %v1759_v8 = vld [vmem:[#allocation12 + $0x128] sm:$0xff] }
0x1c2e   :  { %v1026_v25 = vadd.f32 0.5, %v1025_v24  ;;  %v1758_v24 = vld [vmem:[#allocation12 + $0x120] sm:$0xff] }
0x1c2f   :  { %1449 = vmatpush.bf16.msrb.mxu2 %v1760_v23 }
0x1c30   :  { %v1028_v29 = vmul.f32 %v1026_v25, %v994_v5  ;;  %v1752_v5 = vld [vmem:[#allocation12 + $0xf0] sm:$0xff] }
0x1c31   :  { %1318 = vmatpush.bf16.msra.mxu0 %v1752_v5 }
0x1c33   :  { %1450 = vmatpush.bf16.msrb.mxu2 %v1759_v8 }
0x1c35   :  { %1319 = vmatpush.bf16.msra.mxu0 %v1751_v7 }
0x1c37   :  { %1451 = vmatpush.bf16.msrb.mxu2 %v1758_v24 }
0x1c39   :  { %1320 = vmatpush.bf16.msra.mxu0 %v1750_v9 }
0x1c3d   :  { %1321 = vmatpush.bf16.msra.mxu0 %v1749_v11 }
0x1c41   :  { %1322 = vmatpush.bf16.msra.mxu0 %v1748_v51 }
0x1c45   :  { %1323 = vmatpush.bf16.msra.mxu0 %v1747_v17 }
0x1c49   :  { %1324 = vmatpush.bf16.msra.mxu0 %v1746_v21 }
0x1c9c   :  { %v1031_v26 = vpop.permute.xlu0 %1030 }
0x1c9d   :  { %v1033_v27 = vmul.f32 %v1031_v26, %v1026_v25  ;;  %v1776_v26 = vld [vmem:[%s2308_s5] ss:$0 sm:$0xff] }
0x1c9f   :  { %1035 = vrot.lane.b32.xlu1 %v1033_v27, %s2037_s2 }
0x1d11   :  { %v1036_v32 = vpop.permute.xlu1 %1035 }
0x1d12   :  { %v1038_v6 = vadd.f32 %v1036_v32, %v1028_v29 }
0x1d14   :  { %1867 = vtanh.f32 %v1038_v6 }
0x1d1a   :  { %v1868_v31 = vpop.eup %1867 }
0x1d1b   :  { %1041 = vrot.lane.b32.xlu2 %v1868_v31, %s2032_s15 }
0x1d75   :  { %v1042_v33 = vpop.permute.xlu2 %1041 }
0x1d76   :  { %v1044_v34 = vmul.f32 %v1042_v33, %v1026_v25  ;;  %v1757_v25 = vld [vmem:[#allocation12 + $0x118] sm:$0xff] }
0x1d77   :  { %1452 = vmatpush.bf16.msrb.mxu2 %v1757_v25 }
0x1d78   :  { %v1046_v35 = vpack.c.bf16 %v1044_v34, %v1044_v34 }
0x1d7a   :  { %1048 = vrot.lane.b32.xlu0 %v1046_v35, %s2037_s2  ;;  %v1756_v35 = vld [vmem:[#allocation12 + $0x110] sm:$0xff] }
0x1d7b   :  { %1453 = vmatpush.bf16.msrb.mxu2 %v1756_v35 }
0x1dec   :  { %v1049_v36 = vpop.permute.xlu0 %1048 }
0x1ded   :  { %1570 = vmatmul.msk.bf16.vlgmr.msrb.gmra.mxu1 %vm256_vm0, %v1049_v36  ;;  %v1755_v36 = vld [vmem:[#allocation12 + $0x108] sm:$0xff] }
0x1dee   :  { %1454 = vmatpush.bf16.msrb.mxu2 %v1755_v36 }
0x1df2   :  { %1455 = vmatpush.bf16.msrb.mxu2 %v1754_v37 }
0x1e6a   :  { %v1062_v39 = vpop.f32.mrf.mxu1 }
0x1e6b   :  { %v1066_v14 = vadd.f32 %v1062_v39, %v722_v38  ;;  %v1777_v39 = vld [vmem:[%s2308_s5 + $0x1] ss:$0 sm:$0xff] }
0x1e6d   :  { %1869 = vtanh.f32 %v1066_v14  ;;  %v1067_v41 = vmul.f32 0.5, %v1066_v14 }
0x1e6f   :  { %1871 = vtanh.f32 %v1067_v41 }
0x1e72   :  { %v1064_v40 = vpop.f32.mrf.mxu1 }
0x1e73   :  { %v1870_v2 = vpop.eup %1869 }
0x1e74   :  { %1074 = vrot.lane.b32.xlu1 %v1870_v2, %s2032_s15 }
0x1e75   :  { %v1872_v42 = vpop.eup %1871 }
0x1e76   :  { %v1069_v43 = vmul.f32 0.5, %v1872_v42 }
0x1e78   :  { %v1070_v44 = vadd.f32 0.5, %v1069_v43 }
0x1e7a   :  { %v1072_v45 = vmul.f32 %v1070_v44, %v1038_v6 }
0x1ee6   :  { %v1075_v19 = vpop.permute.xlu1 %1074 }
0x1ee7   :  { %v1077_v20 = vmul.f32 %v1075_v19, %v1070_v44  ;;  %v1778_v19 = vld [vmem:[%s2308_s5 + $0x2] ss:$0 sm:$0xff] }
0x1ee9   :  { %1079 = vrot.lane.b32.xlu2 %v1077_v20, %s2037_s2 }
0x1f43   :  { %v1080_v46 = vpop.permute.xlu2 %1079 }
0x1f44   :  { %v1082_v47 = vadd.f32 %v1080_v46, %v1072_v45 }
0x1f46   :  { %1873 = vtanh.f32 %v1082_v47 }
0x1f4c   :  { %v1874_v28 = vpop.eup %1873 }
0x1f4d   :  { %1085 = vrot.lane.b32.xlu0 %v1874_v28, %s2032_s15 }
0x1fbf   :  { %v1086_v62 = vpop.permute.xlu0 %1085 }
0x1fc0   :  { %v1088_v63 = vmul.f32 %v1086_v62, %v1070_v44 }
0x1fc2   :  { %v1166_v0 = vpack.c.bf16 %v1088_v63, %v1088_v63 }
0x1fc4   :  { %1230 = vrot.lane.b32.xlu1 %v1166_v0, %s2037_s2 }
0x2036   :  { %v1231_v59 = vpop.permute.xlu1 %1230 }
0x2037   :  { %1613 = vmatmul.msk.bf16.vlgmr.msra.gmra.mxu2 %vm256_vm0, %v1231_v59 }
0x20ba   :  { %v1256_v27 = vpop.f32.mrf.mxu2 }
0x20bb   :  { %v1257_v29 = vadd.f32 %v1256_v27, %v1225_v13 }
0x20bd   :  { %v1263_v32 = vadd.f32 %v1776_v26, %v1257_v29 }
0x20bf   :  { %v1264_v6 = vmax.f32 %v1263_v32, 0.0 }
0x20c1   :  { %v1265_v31 = vpack.c.bf16 %v1264_v6, %v1264_v6 }
0x20c2   :  { %v1258_v33 = vpop.f32.mrf.mxu2 }
0x20c3   :  { %v1267_v34 = vrot.slane %v1265_v31, 1  ;;  %1386 = vmatmul.bf16.vlgmr.msra.gmra.mxu1 %v1265_v31 }
0x20c5   :  { %1325 = vmatmul.bf16.vlgmr.msra.gmra.mxu0 %v1267_v34 }
0x2140   :  { %v1387_v38 = vpop.f32.mrf.mxu1 }
0x2142   :  { %v1326_v14 = vpop.f32.mrf.mxu0 }
0x2143   :  { %v1388_v40 = vadd.f32 %v1387_v38, %v1326_v14 }
0x2145   :  { %v1394_v2 = vadd.f32 %v1777_v39, %v1388_v40 }
0x2147   :  { %v1395_v41 = vmax.f32 %v1394_v2, 0.0 }
0x2148   :  { %v1389_v42 = vpop.f32.mrf.mxu1 }
0x2149   :  { %v1396_v43 = vpack.c.bf16 %v1395_v41, %v1395_v41 }
0x214a   :  { %v1328_v44 = vpop.f32.mrf.mxu0 }
0x214b   :  { %1456 = vmatmul.bf16.vlgmr.msrb.gmra.mxu2 %v1396_v43 }
0x21ce   :  { %v1457_v20 = vpop.f32.mrf.mxu2 }
0x21cf   :  { %v1458_v45 = vadd.f32 %v1778_v19, %v1457_v20 }
0x21d1   :  { %1461 = vst [vmem:[#allocation13] sm:$0x3] %v1458_v45 }
0x21d2   :  { %1472 = dma.vmem_to_hbm [thread:$0]  %s1468_s29, 32, %s1470_s8, [#allocation6]  }
0x21d6   :  { %v1459_v46 = vpop.f32.mrf.mxu2 }
0x21d7   :  { %2025 = dma.done.wait [#allocation6], 32  }
0x21d8   :  { %2026 = vsyncadd [#allocation6], 4294967264 }
0x21d9   :  { %1477 = vsyncpa [#allocation5], 1 }
0x21da   :  { %1478 = vsyncpa [#allocation8], 1 }
0x21db   :  { %1479 = vsyncpa [#allocation11], 1 }
0x21dc   :  { %1480 = vsyncpa [#allocation6], 1 }

</bundles_post_ra>
